<compile_context>
chip_gen: v7x
topology: tpu7x:2x2x1
jax: 0.10.0
libtpu: 0.0.40
codegen_flags: <defaults>
</compile_context>

<pallas_src>
import functools

import jax
import jax.numpy as jnp
from jax.experimental import pallas as pl
from jax.experimental.pallas import tpu as pltpu


def _encoder_lstm_kernel(x_ref, wih1_ref, b1_ref, whh1_ref,
                         wih2_ref, b2_ref, whh2_ref,
                         hidden_ref, cell_ref,
                         gates1_scr, y1_scr, gates2_scr,
                         h1_ref, c1_ref, h2_ref, c2_ref,
                         *, seq_len, time_chunk, batch_pad, hidden_dim,
                         needs_mask):
    """One grid step = one time chunk of the fused 2-layer LSTM.

    x_ref      : (TC*Bp, E)  bf16  streamed embedded-input chunk
    wih1_ref   : (E, 4H)     bf16  layer-1 input weights (transposed, [i,f,o,g])
    b1_ref     : (1, 4H)     f32   layer-1 combined bias
    whh1_ref   : (H, 4H)     bf16  layer-1 recurrent weights
    wih2_ref   : (H, 4H)     bf16  layer-2 input weights
    b2_ref     : (1, 4H)     f32   layer-2 combined bias
    whh2_ref   : (H, 4H)     bf16  layer-2 recurrent weights
    hidden_ref : (2, Bp, H)  f32   output: final h per layer (written last chunk)
    cell_ref   : (2, Bp, H)  f32   output: final c per layer (written last chunk)
    gates1_scr : (TC*Bp, 4H) f32   layer-1 chunk input projection
    y1_scr     : (TC*Bp, H)  bf16  layer-1 chunk outputs (feeds layer-2 proj)
    gates2_scr : (TC*Bp, 4H) f32   layer-2 chunk input projection
    h1/c1/h2/c2_ref : (Bp, H) f32  carries, persist across grid steps
    """
    TC, Bp, H = time_chunk, batch_pad, hidden_dim
    chunk = pl.program_id(0)
    unroll = TC if TC <= 8 else 8   # chunk bounds the trip count; partial unroll

    # ---- init carries on the first chunk ------------------------------------
    @pl.when(chunk == 0)
    def _init():
        h1_ref[...] = jnp.zeros_like(h1_ref)
        c1_ref[...] = jnp.zeros_like(c1_ref)
        h2_ref[...] = jnp.zeros_like(h2_ref)
        c2_ref[...] = jnp.zeros_like(c2_ref)

    def cell_update(gates, h_prev, c_prev, step_in_seq):
        # Gate order [i, f, o, g]: one contiguous 3H sigmoid + one H tanh.
        sig = jax.nn.sigmoid(gates[:, :3 * H])
        i_g = sig[:, 0 * H:1 * H]
        f_g = sig[:, 1 * H:2 * H]
        o_g = sig[:, 2 * H:3 * H]
        g_g = jnp.tanh(gates[:, 3 * H:4 * H])
        c_new = f_g * c_prev + i_g * g_g
        h_new = o_g * jnp.tanh(c_new)
        if needs_mask:  # padded tail timesteps must not advance the state
            valid = step_in_seq < seq_len
            h_new = jnp.where(valid, h_new, h_prev)
            c_new = jnp.where(valid, c_new, c_prev)
        return h_new, c_new

    # ---- layer 1: chunk input projection (one MXU matmul) + recurrence ------
    gates1_scr[...] = jnp.dot(
        x_ref[...], wih1_ref[...],
        preferred_element_type=jnp.float32) + b1_ref[...]

    whh1 = whh1_ref[...]                                   # hoisted weight load

    def body1(s, carry):
        h_prev, c_prev = carry
        row = pl.multiple_of(s * Bp, Bp)
        gates = gates1_scr[pl.ds(row, Bp), :] + jnp.dot(
            h_prev.astype(jnp.bfloat16), whh1,
            preferred_element_type=jnp.float32)
        h_new, c_new = cell_update(gates, h_prev, c_prev, chunk * TC + s)
        y1_scr[pl.ds(row, Bp), :] = h_new.astype(jnp.bfloat16)
        return h_new, c_new

    h1, c1 = jax.lax.fori_loop(0, TC, body1, (h1_ref[...], c1_ref[...]),
                               unroll=unroll)
    h1_ref[...] = h1
    c1_ref[...] = c1

    # ---- layer 2: chunk input projection (one MXU matmul) + recurrence ------
    gates2_scr[...] = jnp.dot(
        y1_scr[...], wih2_ref[...],
        preferred_element_type=jnp.float32) + b2_ref[...]

    whh2 = whh2_ref[...]

    def body2(s, carry):
        h_prev, c_prev = carry
        row = pl.multiple_of(s * Bp, Bp)
        gates = gates2_scr[pl.ds(row, Bp), :] + jnp.dot(
            h_prev.astype(jnp.bfloat16), whh2,
            preferred_element_type=jnp.float32)
        return cell_update(gates, h_prev, c_prev, chunk * TC + s)

    h2, c2 = jax.lax.fori_loop(0, TC, body2, (h2_ref[...], c2_ref[...]),
                               unroll=unroll)
    h2_ref[...] = h2
    c2_ref[...] = c2

    # ---- final states written once on the last chunk -------------------------
    @pl.when(chunk == pl.num_programs(0) - 1)
    def _finalize():
        hidden_ref[0] = h1_ref[...]
        hidden_ref[1] = h2_ref[...]
        cell_ref[0] = c1_ref[...]
        cell_ref[1] = c2_ref[...]


def _permute_gate_cols(w):
    """Reorder the trailing 4H gate axis from PyTorch [i, f, g, o] to [i, f, o, g]."""
    i, f, g, o = jnp.split(w, 4, axis=-1)
    return jnp.concatenate([i, f, o, g], axis=-1)


def encoder_forward(params, src, *, time_chunk=None):
    """src: (T, B) int32 token ids.  Returns (hidden, cell): (n_layers, B, H)."""
    layers = params["lstm"]
    assert len(layers) == 2, "fused kernel implements the module's n_layers=2"
    l1, l2 = layers

    T, B = src.shape
    emb = params["embedding"]
    E = emb.shape[1]
    H = l1["w_hh"].shape[1]

    # Embedding gather (+ eval-mode dropout == identity) — XLA glue.
    x = jnp.take(emb, src, axis=0).astype(jnp.float32)          # (T, B, E)

    # Pad batch to the bf16 sublane-pack count so all bf16 MXU tiles are dense.
    Bp = max(16, ((B + 15) // 16) * 16)

    # Time-chunk size: stream the sequence in chunks so VMEM is O(chunk), not
    # O(T).  The default fits comfortably under the smallest budget (v7x:
    # 64 MiB physical / 32 MiB default scope) for realistic E/H.
    if time_chunk is None:
        time_chunk = 16
    TC = max(1, min(time_chunk, T))
    n_chunks = -(-T // TC)
    Tpad = n_chunks * TC
    needs_mask = Tpad != T

    if Tpad != T or Bp != B:
        x = jnp.pad(x, ((0, Tpad - T), (0, Bp - B), (0, 0)))
    # Flatten (time, batch) so chunks are plain row blocks (no in-kernel reshape).
    x2d = x.reshape(Tpad * Bp, E).astype(jnp.bfloat16)          # (Tpad*Bp, E)

    # Weights in bf16 for the MXU, gate columns permuted to [i, f, o, g];
    # biases folded (b_ih + b_hh), kept in f32.
    w_ih1 = _permute_gate_cols(l1["w_ih"].T).astype(jnp.bfloat16)    # (E, 4H)
    w_hh1 = _permute_gate_cols(l1["w_hh"].T).astype(jnp.bfloat16)    # (H, 4H)
    b1 = _permute_gate_cols(
        (l1["b_ih"] + l1["b_hh"])[None, :]).astype(jnp.float32)      # (1, 4H)
    w_ih2 = _permute_gate_cols(l2["w_ih"].T).astype(jnp.bfloat16)    # (H, 4H)
    w_hh2 = _permute_gate_cols(l2["w_hh"].T).astype(jnp.bfloat16)    # (H, 4H)
    b2 = _permute_gate_cols(
        (l2["b_ih"] + l2["b_hh"])[None, :]).astype(jnp.float32)      # (1, 4H)

    kernel = functools.partial(
        _encoder_lstm_kernel, seq_len=T, time_chunk=TC, batch_pad=Bp,
        hidden_dim=H, needs_mask=needs_mask)

    chunk_rows = TC * Bp
    # Explicit VMEM budget (double-buffered streamed input + scratch + weights).
    vmem_est = (2 * chunk_rows * E * 2        # x chunk, bf16, double-buffered
                + chunk_rows * 4 * H * 4      # gates1 scratch (f32)
                + chunk_rows * H * 2          # y1 scratch (bf16)
                + chunk_rows * 4 * H * 4      # gates2 scratch (f32)
                + (E + 3 * H) * 4 * H * 2     # weights (bf16)
                + 2 * 4 * H * 4               # biases (f32)
                + 4 * Bp * H * 4              # h/c carries (f32)
                + 2 * 2 * Bp * H * 4)         # hidden/cell outputs (f32)
    vmem_limit = int(min(max(32 * 1024 * 1024, 2 * vmem_est),
                         100 * 1024 * 1024))

    cost = pl.CostEstimate(
        flops=int(2 * Tpad * Bp * 4 * H * (E + 3 * H)),
        transcendentals=int(2 * 5 * Tpad * Bp * H),
        bytes_accessed=int(x2d.size * 2 + (E + 3 * H) * 4 * H * 2
                           + 2 * 4 * H * 4 + 4 * Bp * H * 4),
    )

    grid_spec = pltpu.PrefetchScalarGridSpec(
        num_scalar_prefetch=0,
        grid=(n_chunks,),
        in_specs=[
            pl.BlockSpec((chunk_rows, E), lambda t: (t, 0)),   # streamed x chunk
            pl.BlockSpec((E, 4 * H), lambda t: (0, 0)),        # w_ih1 (resident)
            pl.BlockSpec((1, 4 * H), lambda t: (0, 0)),        # b1
            pl.BlockSpec((H, 4 * H), lambda t: (0, 0)),        # w_hh1
            pl.BlockSpec((H, 4 * H), lambda t: (0, 0)),        # w_ih2
            pl.BlockSpec((1, 4 * H), lambda t: (0, 0)),        # b2
            pl.BlockSpec((H, 4 * H), lambda t: (0, 0)),        # w_hh2
        ],
        out_specs=[
            pl.BlockSpec((2, Bp, H), lambda t: (0, 0, 0)),     # hidden
            pl.BlockSpec((2, Bp, H), lambda t: (0, 0, 0)),     # cell
        ],
        scratch_shapes=[
            pltpu.VMEM((chunk_rows, 4 * H), jnp.float32),      # gates1
            pltpu.VMEM((chunk_rows, H), jnp.bfloat16),         # y1 (layer-1 out)
            pltpu.VMEM((chunk_rows, 4 * H), jnp.float32),      # gates2
            pltpu.VMEM((Bp, H), jnp.float32),                  # h1 carry
            pltpu.VMEM((Bp, H), jnp.float32),                  # c1 carry
            pltpu.VMEM((Bp, H), jnp.float32),                  # h2 carry
            pltpu.VMEM((Bp, H), jnp.float32),                  # c2 carry
        ],
    )

    hidden, cell = pl.pallas_call(
        kernel,
        out_shape=(
            jax.ShapeDtypeStruct((2, Bp, H), jnp.float32),
            jax.ShapeDtypeStruct((2, Bp, H), jnp.float32),
        ),
        grid_spec=grid_spec,
        compiler_params=pltpu.CompilerParams(
            dimension_semantics=("arbitrary",),   # time recurrence is sequential
            vmem_limit_bytes=vmem_limit,
        ),
        cost_estimate=cost,
    )(x2d, w_ih1, b1, w_hh1, w_ih2, b2, w_hh2)

    # Drop the batch padding.
    return hidden[:, :B, :], cell[:, :B, :]


def init_encoder_params(key, input_dim, emb_dim, hidden_dim, n_layers):
    """Deterministic synthetic parameters with PyTorch-matching shapes."""
    params = {}
    k_emb, key = jax.random.split(key)
    params["embedding"] = jax.random.normal(
        k_emb, (input_dim, emb_dim), jnp.float32) * 0.1

    layers = []
    for layer in range(n_layers):
        d_in = emb_dim if layer == 0 else hidden_dim
        k1, k2, k3, k4, key = jax.random.split(key, 5)
        scale = 1.0 / jnp.sqrt(hidden_dim)
        layers.append(dict(
            w_ih=jax.random.uniform(k1, (4 * hidden_dim, d_in),
                                    jnp.float32, -scale, scale),
            w_hh=jax.random.uniform(k2, (4 * hidden_dim, hidden_dim),
                                    jnp.float32, -scale, scale),
            b_ih=jax.random.uniform(k3, (4 * hidden_dim,),
                                    jnp.float32, -scale, scale),
            b_hh=jax.random.uniform(k4, (4 * hidden_dim,),
                                    jnp.float32, -scale, scale),
        ))
    params["lstm"] = layers
    return params


def _reference_encoder(params, src):
    """Pure-JAX f32 reference (same math as PyTorch eval-mode Encoder.forward)."""
    x = jnp.take(params["embedding"], src, axis=0).astype(jnp.float32)
    hs, cs = [], []
    for lp in params["lstm"]:
        w_ih, w_hh = lp["w_ih"], lp["w_hh"]
        b = lp["b_ih"] + lp["b_hh"]
        H = w_hh.shape[1]
        B = x.shape[1]

        def step(carry, x_t, w_ih=w_ih, w_hh=w_hh, b=b, H=H):
            h, c = carry
            g = x_t @ w_ih.T + h @ w_hh.T + b
            i = jax.nn.sigmoid(g[:, 0 * H:1 * H])
            f = jax.nn.sigmoid(g[:, 1 * H:2 * H])
            gg = jnp.tanh(g[:, 2 * H:3 * H])
            o = jax.nn.sigmoid(g[:, 3 * H:4 * H])
            c = f * c + i * gg
            h = o * jnp.tanh(c)
            return (h, c), h

        init = (jnp.zeros((B, H), jnp.float32), jnp.zeros((B, H), jnp.float32))
        (h, c), y = jax.lax.scan(step, init, x)
        hs.append(h)
        cs.append(c)
        x = y  # inter-layer dropout is identity in eval mode
    return jnp.stack(hs, axis=0), jnp.stack(cs, axis=0)


if __name__ == "__main__":
    # Small shapes consistent with the module's forward:
    #   src: (seq_len, batch) of token ids in [0, vocab).
    vocab_size = 50
    emb_dim = 32
    hidden_dim = 32
    n_layers = 2
    seq_len = 8
    batch = 2

    key = jax.random.PRNGKey(0)
    k_params, k_src = jax.random.split(key)

    params = init_encoder_params(k_params, vocab_size, emb_dim,
                                 hidden_dim, n_layers)
    src = jax.random.randint(k_src, (seq_len, batch), 0, vocab_size,
                             dtype=jnp.int32)

    # time_chunk=4 -> a 2-step grid, exercising the cross-chunk carry path.
    hidden, cell = encoder_forward(params, src, time_chunk=4)
    jax.block_until_ready((hidden, cell))

    assert hidden.shape == (n_layers, batch, hidden_dim)
    assert cell.shape == (n_layers, batch, hidden_dim)
    assert jnp.all(jnp.isfinite(hidden)) and jnp.all(jnp.isfinite(cell))

    # Numerical check against a pure-JAX f32 reference.  Tolerance is loosened
    # vs. the f32-only kernel because MXU inputs are bf16 (elementwise cell
    # math stays f32).
    h_ref, c_ref = _reference_encoder(params, src)
    assert jnp.allclose(hidden, h_ref, atol=2e-2, rtol=2e-2), (
        float(jnp.max(jnp.abs(hidden - h_ref))))
    assert jnp.allclose(cell, c_ref, atol=2e-2, rtol=2e-2), (
        float(jnp.max(jnp.abs(cell - c_ref))))

    # TODO(synk): training-mode dropout (p=0.5) is not implemented; forward is
    # eval-mode (identity dropout), matching deterministic inference semantics.
    print("KERNEL_OK")
</pallas_src>

<mosaic_0001>
module attributes {stable_mosaic.version = 11 : i64} {
  func.func @_encoder_lstm_kernel(%arg0: i32, %arg1: memref<64x32xbf16, #tpu.memory_space<vmem>>, %arg2: memref<32x128xbf16, #tpu.memory_space<vmem>>, %arg3: memref<1x128xf32, #tpu.memory_space<vmem>>, %arg4: memref<32x128xbf16, #tpu.memory_space<vmem>>, %arg5: memref<32x128xbf16, #tpu.memory_space<vmem>>, %arg6: memref<1x128xf32, #tpu.memory_space<vmem>>, %arg7: memref<32x128xbf16, #tpu.memory_space<vmem>>, %arg8: memref<2x16x32xf32, #tpu.memory_space<vmem>>, %arg9: memref<2x16x32xf32, #tpu.memory_space<vmem>>, %arg10: memref<64x128xf32, #tpu.memory_space<vmem>>, %arg11: memref<64x32xbf16, #tpu.memory_space<vmem>>, %arg12: memref<64x128xf32, #tpu.memory_space<vmem>>, %arg13: memref<16x32xf32, #tpu.memory_space<vmem>>, %arg14: memref<16x32xf32, #tpu.memory_space<vmem>>, %arg15: memref<16x32xf32, #tpu.memory_space<vmem>>, %arg16: memref<16x32xf32, #tpu.memory_space<vmem>>) attributes {dimension_semantics = [#tpu.dimension_semantics<arbitrary>], iteration_bounds = array<i64: 2>, scalar_prefetch = 0 : i64, scratch_operands = 7 : i64, tpu.core_type = #tpu.core_type<tc>, window_params = [{transform_indices = @transform_0, window_bounds = array<i64: 64, 32>}, {pipeline_mode = #tpu.pipeline_mode<synchronous>, transform_indices = @transform_1, window_bounds = array<i64: 32, 128>}, {pipeline_mode = #tpu.pipeline_mode<synchronous>, transform_indices = @transform_2, window_bounds = array<i64: 1, 128>}, {pipeline_mode = #tpu.pipeline_mode<synchronous>, transform_indices = @transform_3, window_bounds = array<i64: 32, 128>}, {pipeline_mode = #tpu.pipeline_mode<synchronous>, transform_indices = @transform_4, window_bounds = array<i64: 32, 128>}, {pipeline_mode = #tpu.pipeline_mode<synchronous>, transform_indices = @transform_5, window_bounds = array<i64: 1, 128>}, {pipeline_mode = #tpu.pipeline_mode<synchronous>, transform_indices = @transform_6, window_bounds = array<i64: 32, 128>}, {pipeline_mode = #tpu.pipeline_mode<synchronous>, transform_indices = @transform_7, window_bounds = array<i64: 2, 16, 32>}, {pipeline_mode = #tpu.pipeline_mode<synchronous>, transform_indices = @transform_8, window_bounds = array<i64: 2, 16, 32>}]} {
    %c0_i32 = arith.constant 0 : i32
    %0 = arith.cmpi eq, %arg0, %c0_i32 : i32
    %1 = arith.extui %0 : i1 to i32
    %c0_i32_0 = arith.constant 0 : i32
    %2 = arith.cmpi ne, %1, %c0_i32_0 : i32
    scf.if %2 {
      %cst_80 = arith.constant 0.000000e+00 : f32
      %226 = vector.broadcast %cst_80 : f32 to vector<16x32xf32>
      %c0_81 = arith.constant 0 : index
      %c0_82 = arith.constant 0 : index
      %227 = vector.load %arg13[%c0_81, %c0_82] : memref<16x32xf32, #tpu.memory_space<vmem>>, vector<16x32xf32>
      tpu.vector_store %arg13[%c0_81, %c0_82], %226 {strides = array<i32>} : memref<16x32xf32, #tpu.memory_space<vmem>>, vector<16x32xf32>,
      %cst_83 = arith.constant 0.000000e+00 : f32
      %228 = vector.broadcast %cst_83 : f32 to vector<16x32xf32>
      %c0_84 = arith.constant 0 : index
      %c0_85 = arith.constant 0 : index
      %229 = vector.load %arg14[%c0_84, %c0_85] : memref<16x32xf32, #tpu.memory_space<vmem>>, vector<16x32xf32>
      tpu.vector_store %arg14[%c0_84, %c0_85], %228 {strides = array<i32>} : memref<16x32xf32, #tpu.memory_space<vmem>>, vector<16x32xf32>,
      %cst_86 = arith.constant 0.000000e+00 : f32
      %230 = vector.broadcast %cst_86 : f32 to vector<16x32xf32>
      %c0_87 = arith.constant 0 : index
      %c0_88 = arith.constant 0 : index
      %231 = vector.load %arg15[%c0_87, %c0_88] : memref<16x32xf32, #tpu.memory_space<vmem>>, vector<16x32xf32>
      tpu.vector_store %arg15[%c0_87, %c0_88], %230 {strides = array<i32>} : memref<16x32xf32, #tpu.memory_space<vmem>>, vector<16x32xf32>,
      %cst_89 = arith.constant 0.000000e+00 : f32
      %232 = vector.broadcast %cst_89 : f32 to vector<16x32xf32>
      %c0_90 = arith.constant 0 : index
      %c0_91 = arith.constant 0 : index
      %233 = vector.load %arg16[%c0_90, %c0_91] : memref<16x32xf32, #tpu.memory_space<vmem>>, vector<16x32xf32>
      tpu.vector_store %arg16[%c0_90, %c0_91], %232 {strides = array<i32>} : memref<16x32xf32, #tpu.memory_space<vmem>>, vector<16x32xf32>,
    } else {
    }
    %c0 = arith.constant 0 : index
    %c0_1 = arith.constant 0 : index
    %3 = vector.load %arg1[%c0, %c0_1] : memref<64x32xbf16, #tpu.memory_space<vmem>>, vector<64x32xbf16>
    %c0_2 = arith.constant 0 : index
    %c0_3 = arith.constant 0 : index
    %4 = vector.load %arg2[%c0_2, %c0_3] : memref<32x128xbf16, #tpu.memory_space<vmem>>, vector<32x128xbf16>
    %cst = arith.constant dense<0.000000e+00> : vector<64x128xf32>
    %5 = tpu.matmul %3, %4, %cst {dimension_numbers = #tpu.dot_dimension_numbers<[1], [0], [0], [1], [0, 0, 1, 1], [], []>} : vector<64x32xbf16>, vector<32x128xbf16>, vector<64x128xf32> -> vector<64x128xf32>
    %c0_4 = arith.constant 0 : index
    %c0_5 = arith.constant 0 : index
    %6 = vector.load %arg3[%c0_4, %c0_5] : memref<1x128xf32, #tpu.memory_space<vmem>>, vector<1x128xf32>
    %7 = vector.broadcast %6 : vector<1x128xf32> to vector<64x128xf32>
    %8 = arith.addf %5, %7 : vector<64x128xf32>
    %c0_6 = arith.constant 0 : index
    %c0_7 = arith.constant 0 : index
    %9 = vector.load %arg10[%c0_6, %c0_7] : memref<64x128xf32, #tpu.memory_space<vmem>>, vector<64x128xf32>
    tpu.vector_store %arg10[%c0_6, %c0_7], %8 {strides = array<i32>} : memref<64x128xf32, #tpu.memory_space<vmem>>, vector<64x128xf32>,
    %c0_8 = arith.constant 0 : index
    %c0_9 = arith.constant 0 : index
    %10 = vector.load %arg4[%c0_8, %c0_9] : memref<32x128xbf16, #tpu.memory_space<vmem>>, vector<32x128xbf16>
    %c0_10 = arith.constant 0 : index
    %c0_11 = arith.constant 0 : index
    %11 = vector.load %arg13[%c0_10, %c0_11] : memref<16x32xf32, #tpu.memory_space<vmem>>, vector<16x32xf32>
    %c0_12 = arith.constant 0 : index
    %c0_13 = arith.constant 0 : index
    %12 = vector.load %arg14[%c0_12, %c0_13] : memref<16x32xf32, #tpu.memory_space<vmem>>, vector<16x32xf32>
    %c0_i32_14 = arith.constant 0 : i32
    %c16_i32 = arith.constant 16 : i32
    %13 = arith.muli %c0_i32_14, %c16_i32 : i32
    %14 = tpu.assume_multiple %13, 16 : i32
    %15 = arith.index_cast %14 : i32 to index
    %c0_15 = arith.constant 0 : index
    %16 = vector.load %arg10[%15, %c0_15] : memref<64x128xf32, #tpu.memory_space<vmem>>, vector<16x128xf32>
    %17 = arith.truncf %11 : vector<16x32xf32> to vector<16x32xbf16>
    %cst_16 = arith.constant dense<0.000000e+00> : vector<16x128xf32>
    %18 = tpu.matmul %17, %10, %cst_16 {dimension_numbers = #tpu.dot_dimension_numbers<[1], [0], [0], [1], [0, 0, 1, 1], [], []>} : vector<16x32xbf16>, vector<32x128xbf16>, vector<16x128xf32> -> vector<16x128xf32>
    %19 = arith.addf %16, %18 : vector<16x128xf32>
    %20 = vector.extract_strided_slice %19 {offsets = [0, 0], sizes = [16, 96], strides = [1, 1]} : vector<16x128xf32> to vector<16x96xf32>
    %21 = arith.negf %20 : vector<16x96xf32>
    %22 = math.exp %21 : vector<16x96xf32>
    %cst_17 = arith.constant 1.000000e+00 : f32
    %23 = vector.broadcast %cst_17 : f32 to vector<16x96xf32>
    %24 = arith.addf %23, %22 : vector<16x96xf32>
    %25 = arith.divf %23, %24 : vector<16x96xf32>
    %26 = vector.extract_strided_slice %25 {offsets = [0, 0], sizes = [16, 32], strides = [1, 1]} : vector<16x96xf32> to vector<16x32xf32>
    %27 = vector.extract_strided_slice %25 {offsets = [0, 32], sizes = [16, 32], strides = [1, 1]} : vector<16x96xf32> to vector<16x32xf32>
    %28 = vector.extract_strided_slice %25 {offsets = [0, 64], sizes = [16, 32], strides = [1, 1]} : vector<16x96xf32> to vector<16x32xf32>
    %29 = vector.extract_strided_slice %19 {offsets = [0, 96], sizes = [16, 32], strides = [1, 1]} : vector<16x128xf32> to vector<16x32xf32>
    %30 = math.tanh %29 : vector<16x32xf32>
    %31 = arith.mulf %27, %12 : vector<16x32xf32>
    %32 = arith.mulf %26, %30 : vector<16x32xf32>
    %33 = arith.addf %31, %32 : vector<16x32xf32>
    %34 = math.tanh %33 : vector<16x32xf32>
    %35 = arith.mulf %28, %34 : vector<16x32xf32>
    %36 = arith.truncf %35 : vector<16x32xf32> to vector<16x32xbf16>
    %37 = arith.index_cast %14 : i32 to index
    %c0_18 = arith.constant 0 : index
    %38 = vector.load %arg11[%37, %c0_18] : memref<64x32xbf16, #tpu.memory_space<vmem>>, vector<16x32xbf16>
    tpu.vector_store %arg11[%37, %c0_18], %36 {strides = array<i32>} : memref<64x32xbf16, #tpu.memory_space<vmem>>, vector<16x32xbf16>,
    %c1_i32 = arith.constant 1 : i32
    %c16_i32_19 = arith.constant 16 : i32
    %39 = arith.muli %c1_i32, %c16_i32_19 : i32
    %40 = tpu.assume_multiple %39, 16 : i32
    %41 = arith.index_cast %40 : i32 to index
    %c0_20 = arith.constant 0 : index
    %42 = vector.load %arg10[%41, %c0_20] : memref<64x128xf32, #tpu.memory_space<vmem>>, vector<16x128xf32>
    %43 = arith.truncf %35 : vector<16x32xf32> to vector<16x32xbf16>
    %cst_21 = arith.constant dense<0.000000e+00> : vector<16x128xf32>
    %44 = tpu.matmul %43, %10, %cst_21 {dimension_numbers = #tpu.dot_dimension_numbers<[1], [0], [0], [1], [0, 0, 1, 1], [], []>} : vector<16x32xbf16>, vector<32x128xbf16>, vector<16x128xf32> -> vector<16x128xf32>
    %45 = arith.addf %42, %44 : vector<16x128xf32>
    %46 = vector.extract_strided_slice %45 {offsets = [0, 0], sizes = [16, 96], strides = [1, 1]} : vector<16x128xf32> to vector<16x96xf32>
    %47 = arith.negf %46 : vector<16x96xf32>
    %48 = math.exp %47 : vector<16x96xf32>
    %cst_22 = arith.constant 1.000000e+00 : f32
    %49 = vector.broadcast %cst_22 : f32 to vector<16x96xf32>
    %50 = arith.addf %49, %48 : vector<16x96xf32>
    %51 = arith.divf %49, %50 : vector<16x96xf32>
    %52 = vector.extract_strided_slice %51 {offsets = [0, 0], sizes = [16, 32], strides = [1, 1]} : vector<16x96xf32> to vector<16x32xf32>
    %53 = vector.extract_strided_slice %51 {offsets = [0, 32], sizes = [16, 32], strides = [1, 1]} : vector<16x96xf32> to vector<16x32xf32>
    %54 = vector.extract_strided_slice %51 {offsets = [0, 64], sizes = [16, 32], strides = [1, 1]} : vector<16x96xf32> to vector<16x32xf32>
    %55 = vector.extract_strided_slice %45 {offsets = [0, 96], sizes = [16, 32], strides = [1, 1]} : vector<16x128xf32> to vector<16x32xf32>
    %56 = math.tanh %55 : vector<16x32xf32>
    %57 = arith.mulf %53, %33 : vector<16x32xf32>
    %58 = arith.mulf %52, %56 : vector<16x32xf32>
    %59 = arith.addf %57, %58 : vector<16x32xf32>
    %60 = math.tanh %59 : vector<16x32xf32>
    %61 = arith.mulf %54, %60 : vector<16x32xf32>
    %62 = arith.truncf %61 : vector<16x32xf32> to vector<16x32xbf16>
    %63 = arith.index_cast %40 : i32 to index
    %c0_23 = arith.constant 0 : index
    %64 = vector.load %arg11[%63, %c0_23] : memref<64x32xbf16, #tpu.memory_space<vmem>>, vector<16x32xbf16>
    tpu.vector_store %arg11[%63, %c0_23], %62 {strides = array<i32>} : memref<64x32xbf16, #tpu.memory_space<vmem>>, vector<16x32xbf16>,
    %c2_i32 = arith.constant 2 : i32
    %c16_i32_24 = arith.constant 16 : i32
    %65 = arith.muli %c2_i32, %c16_i32_24 : i32
    %66 = tpu.assume_multiple %65, 16 : i32
    %67 = arith.index_cast %66 : i32 to index
    %c0_25 = arith.constant 0 : index
    %68 = vector.load %arg10[%67, %c0_25] : memref<64x128xf32, #tpu.memory_space<vmem>>, vector<16x128xf32>
    %69 = arith.truncf %61 : vector<16x32xf32> to vector<16x32xbf16>
    %cst_26 = arith.constant dense<0.000000e+00> : vector<16x128xf32>
    %70 = tpu.matmul %69, %10, %cst_26 {dimension_numbers = #tpu.dot_dimension_numbers<[1], [0], [0], [1], [0, 0, 1, 1], [], []>} : vector<16x32xbf16>, vector<32x128xbf16>, vector<16x128xf32> -> vector<16x128xf32>
    %71 = arith.addf %68, %70 : vector<16x128xf32>
    %72 = vector.extract_strided_slice %71 {offsets = [0, 0], sizes = [16, 96], strides = [1, 1]} : vector<16x128xf32> to vector<16x96xf32>
    %73 = arith.negf %72 : vector<16x96xf32>
    %74 = math.exp %73 : vector<16x96xf32>
    %cst_27 = arith.constant 1.000000e+00 : f32
    %75 = vector.broadcast %cst_27 : f32 to vector<16x96xf32>
    %76 = arith.addf %75, %74 : vector<16x96xf32>
    %77 = arith.divf %75, %76 : vector<16x96xf32>
    %78 = vector.extract_strided_slice %77 {offsets = [0, 0], sizes = [16, 32], strides = [1, 1]} : vector<16x96xf32> to vector<16x32xf32>
    %79 = vector.extract_strided_slice %77 {offsets = [0, 32], sizes = [16, 32], strides = [1, 1]} : vector<16x96xf32> to vector<16x32xf32>
    %80 = vector.extract_strided_slice %77 {offsets = [0, 64], sizes = [16, 32], strides = [1, 1]} : vector<16x96xf32> to vector<16x32xf32>
    %81 = vector.extract_strided_slice %71 {offsets = [0, 96], sizes = [16, 32], strides = [1, 1]} : vector<16x128xf32> to vector<16x32xf32>
    %82 = math.tanh %81 : vector<16x32xf32>
    %83 = arith.mulf %79, %59 : vector<16x32xf32>
    %84 = arith.mulf %78, %82 : vector<16x32xf32>
    %85 = arith.addf %83, %84 : vector<16x32xf32>
    %86 = math.tanh %85 : vector<16x32xf32>
    %87 = arith.mulf %80, %86 : vector<16x32xf32>
    %88 = arith.truncf %87 : vector<16x32xf32> to vector<16x32xbf16>
    %89 = arith.index_cast %66 : i32 to index
    %c0_28 = arith.constant 0 : index
    %90 = vector.load %arg11[%89, %c0_28] : memref<64x32xbf16, #tpu.memory_space<vmem>>, vector<16x32xbf16>
    tpu.vector_store %arg11[%89, %c0_28], %88 {strides = array<i32>} : memref<64x32xbf16, #tpu.memory_space<vmem>>, vector<16x32xbf16>,
    %c3_i32 = arith.constant 3 : i32
    %c16_i32_29 = arith.constant 16 : i32
    %91 = arith.muli %c3_i32, %c16_i32_29 : i32
    %92 = tpu.assume_multiple %91, 16 : i32
    %93 = arith.index_cast %92 : i32 to index
    %c0_30 = arith.constant 0 : index
    %94 = vector.load %arg10[%93, %c0_30] : memref<64x128xf32, #tpu.memory_space<vmem>>, vector<16x128xf32>
    %95 = arith.truncf %87 : vector<16x32xf32> to vector<16x32xbf16>
    %cst_31 = arith.constant dense<0.000000e+00> : vector<16x128xf32>
    %96 = tpu.matmul %95, %10, %cst_31 {dimension_numbers = #tpu.dot_dimension_numbers<[1], [0], [0], [1], [0, 0, 1, 1], [], []>} : vector<16x32xbf16>, vector<32x128xbf16>, vector<16x128xf32> -> vector<16x128xf32>
    %97 = arith.addf %94, %96 : vector<16x128xf32>
    %98 = vector.extract_strided_slice %97 {offsets = [0, 0], sizes = [16, 96], strides = [1, 1]} : vector<16x128xf32> to vector<16x96xf32>
    %99 = arith.negf %98 : vector<16x96xf32>
    %100 = math.exp %99 : vector<16x96xf32>
    %cst_32 = arith.constant 1.000000e+00 : f32
    %101 = vector.broadcast %cst_32 : f32 to vector<16x96xf32>
    %102 = arith.addf %101, %100 : vector<16x96xf32>
    %103 = arith.divf %101, %102 : vector<16x96xf32>
    %104 = vector.extract_strided_slice %103 {offsets = [0, 0], sizes = [16, 32], strides = [1, 1]} : vector<16x96xf32> to vector<16x32xf32>
    %105 = vector.extract_strided_slice %103 {offsets = [0, 32], sizes = [16, 32], strides = [1, 1]} : vector<16x96xf32> to vector<16x32xf32>
    %106 = vector.extract_strided_slice %103 {offsets = [0, 64], sizes = [16, 32], strides = [1, 1]} : vector<16x96xf32> to vector<16x32xf32>
    %107 = vector.extract_strided_slice %97 {offsets = [0, 96], sizes = [16, 32], strides = [1, 1]} : vector<16x128xf32> to vector<16x32xf32>
    %108 = math.tanh %107 : vector<16x32xf32>
    %109 = arith.mulf %105, %85 : vector<16x32xf32>
    %110 = arith.mulf %104, %108 : vector<16x32xf32>
    %111 = arith.addf %109, %110 : vector<16x32xf32>
    %112 = math.tanh %111 : vector<16x32xf32>
    %113 = arith.mulf %106, %112 : vector<16x32xf32>
    %114 = arith.truncf %113 : vector<16x32xf32> to vector<16x32xbf16>
    %115 = arith.index_cast %92 : i32 to index
    %c0_33 = arith.constant 0 : index
    %116 = vector.load %arg11[%115, %c0_33] : memref<64x32xbf16, #tpu.memory_space<vmem>>, vector<16x32xbf16>
    tpu.vector_store %arg11[%115, %c0_33], %114 {strides = array<i32>} : memref<64x32xbf16, #tpu.memory_space<vmem>>, vector<16x32xbf16>,
    %c4_i32 = arith.constant 4 : i32
    %c0_34 = arith.constant 0 : index
    %c0_35 = arith.constant 0 : index
    %117 = vector.load %arg13[%c0_34, %c0_35] : memref<16x32xf32, #tpu.memory_space<vmem>>, vector<16x32xf32>
    tpu.vector_store %arg13[%c0_34, %c0_35], %113 {strides = array<i32>} : memref<16x32xf32, #tpu.memory_space<vmem>>, vector<16x32xf32>,
    %c0_36 = arith.constant 0 : index
    %c0_37 = arith.constant 0 : index
    %118 = vector.load %arg14[%c0_36, %c0_37] : memref<16x32xf32, #tpu.memory_space<vmem>>, vector<16x32xf32>
    tpu.vector_store %arg14[%c0_36, %c0_37], %111 {strides = array<i32>} : memref<16x32xf32, #tpu.memory_space<vmem>>, vector<16x32xf32>,
    %c0_38 = arith.constant 0 : index
    %c0_39 = arith.constant 0 : index
    %119 = vector.load %arg11[%c0_38, %c0_39] : memref<64x32xbf16, #tpu.memory_space<vmem>>, vector<64x32xbf16>
    %c0_40 = arith.constant 0 : index
    %c0_41 = arith.constant 0 : index
    %120 = vector.load %arg5[%c0_40, %c0_41] : memref<32x128xbf16, #tpu.memory_space<vmem>>, vector<32x128xbf16>
    %cst_42 = arith.constant dense<0.000000e+00> : vector<64x128xf32>
    %121 = tpu.matmul %119, %120, %cst_42 {dimension_numbers = #tpu.dot_dimension_numbers<[1], [0], [0], [1], [0, 0, 1, 1], [], []>} : vector<64x32xbf16>, vector<32x128xbf16>, vector<64x128xf32> -> vector<64x128xf32>
    %c0_43 = arith.constant 0 : index
    %c0_44 = arith.constant 0 : index
    %122 = vector.load %arg6[%c0_43, %c0_44] : memref<1x128xf32, #tpu.memory_space<vmem>>, vector<1x128xf32>
    %123 = vector.broadcast %122 : vector<1x128xf32> to vector<64x128xf32>
    %124 = arith.addf %121, %123 : vector<64x128xf32>
    %c0_45 = arith.constant 0 : index
    %c0_46 = arith.constant 0 : index
    %125 = vector.load %arg12[%c0_45, %c0_46] : memref<64x128xf32, #tpu.memory_space<vmem>>, vector<64x128xf32>
    tpu.vector_store %arg12[%c0_45, %c0_46], %124 {strides = array<i32>} : memref<64x128xf32, #tpu.memory_space<vmem>>, vector<64x128xf32>,
    %c0_47 = arith.constant 0 : index
    %c0_48 = arith.constant 0 : index
    %126 = vector.load %arg7[%c0_47, %c0_48] : memref<32x128xbf16, #tpu.memory_space<vmem>>, vector<32x128xbf16>
    %c0_49 = arith.constant 0 : index
    %c0_50 = arith.constant 0 : index
    %127 = vector.load %arg15[%c0_49, %c0_50] : memref<16x32xf32, #tpu.memory_space<vmem>>, vector<16x32xf32>
    %c0_51 = arith.constant 0 : index
    %c0_52 = arith.constant 0 : index
    %128 = vector.load %arg16[%c0_51, %c0_52] : memref<16x32xf32, #tpu.memory_space<vmem>>, vector<16x32xf32>
    %c0_i32_53 = arith.constant 0 : i32
    %c16_i32_54 = arith.constant 16 : i32
    %129 = arith.muli %c0_i32_53, %c16_i32_54 : i32
    %130 = tpu.assume_multiple %129, 16 : i32
    %131 = arith.index_cast %130 : i32 to index
    %c0_55 = arith.constant 0 : index
    %132 = vector.load %arg12[%131, %c0_55] : memref<64x128xf32, #tpu.memory_space<vmem>>, vector<16x128xf32>
    %133 = arith.truncf %127 : vector<16x32xf32> to vector<16x32xbf16>
    %cst_56 = arith.constant dense<0.000000e+00> : vector<16x128xf32>
    %134 = tpu.matmul %133, %126, %cst_56 {dimension_numbers = #tpu.dot_dimension_numbers<[1], [0], [0], [1], [0, 0, 1, 1], [], []>} : vector<16x32xbf16>, vector<32x128xbf16>, vector<16x128xf32> -> vector<16x128xf32>
    %135 = arith.addf %132, %134 : vector<16x128xf32>
    %136 = vector.extract_strided_slice %135 {offsets = [0, 0], sizes = [16, 96], strides = [1, 1]} : vector<16x128xf32> to vector<16x96xf32>
    %137 = arith.negf %136 : vector<16x96xf32>
    %138 = math.exp %137 : vector<16x96xf32>
    %cst_57 = arith.constant 1.000000e+00 : f32
    %139 = vector.broadcast %cst_57 : f32 to vector<16x96xf32>
    %140 = arith.addf %139, %138 : vector<16x96xf32>
    %141 = arith.divf %139, %140 : vector<16x96xf32>
    %142 = vector.extract_strided_slice %141 {offsets = [0, 0], sizes = [16, 32], strides = [1, 1]} : vector<16x96xf32> to vector<16x32xf32>
    %143 = vector.extract_strided_slice %141 {offsets = [0, 32], sizes = [16, 32], strides = [1, 1]} : vector<16x96xf32> to vector<16x32xf32>
    %144 = vector.extract_strided_slice %141 {offsets = [0, 64], sizes = [16, 32], strides = [1, 1]} : vector<16x96xf32> to vector<16x32xf32>
    %145 = vector.extract_strided_slice %135 {offsets = [0, 96], sizes = [16, 32], strides = [1, 1]} : vector<16x128xf32> to vector<16x32xf32>
    %146 = math.tanh %145 : vector<16x32xf32>
    %147 = arith.mulf %143, %128 : vector<16x32xf32>
    %148 = arith.mulf %142, %146 : vector<16x32xf32>
    %149 = arith.addf %147, %148 : vector<16x32xf32>
    %150 = math.tanh %149 : vector<16x32xf32>
    %151 = arith.mulf %144, %150 : vector<16x32xf32>
    %c1_i32_58 = arith.constant 1 : i32
    %c16_i32_59 = arith.constant 16 : i32
    %152 = arith.muli %c1_i32_58, %c16_i32_59 : i32
    %153 = tpu.assume_multiple %152, 16 : i32
    %154 = arith.index_cast %153 : i32 to index
    %c0_60 = arith.constant 0 : index
    %155 = vector.load %arg12[%154, %c0_60] : memref<64x128xf32, #tpu.memory_space<vmem>>, vector<16x128xf32>
    %156 = arith.truncf %151 : vector<16x32xf32> to vector<16x32xbf16>
    %cst_61 = arith.constant dense<0.000000e+00> : vector<16x128xf32>
    %157 = tpu.matmul %156, %126, %cst_61 {dimension_numbers = #tpu.dot_dimension_numbers<[1], [0], [0], [1], [0, 0, 1, 1], [], []>} : vector<16x32xbf16>, vector<32x128xbf16>, vector<16x128xf32> -> vector<16x128xf32>
    %158 = arith.addf %155, %157 : vector<16x128xf32>
    %159 = vector.extract_strided_slice %158 {offsets = [0, 0], sizes = [16, 96], strides = [1, 1]} : vector<16x128xf32> to vector<16x96xf32>
    %160 = arith.negf %159 : vector<16x96xf32>
    %161 = math.exp %160 : vector<16x96xf32>
    %cst_62 = arith.constant 1.000000e+00 : f32
    %162 = vector.broadcast %cst_62 : f32 to vector<16x96xf32>
    %163 = arith.addf %162, %161 : vector<16x96xf32>
    %164 = arith.divf %162, %163 : vector<16x96xf32>
    %165 = vector.extract_strided_slice %164 {offsets = [0, 0], sizes = [16, 32], strides = [1, 1]} : vector<16x96xf32> to vector<16x32xf32>
    %166 = vector.extract_strided_slice %164 {offsets = [0, 32], sizes = [16, 32], strides = [1, 1]} : vector<16x96xf32> to vector<16x32xf32>
    %167 = vector.extract_strided_slice %164 {offsets = [0, 64], sizes = [16, 32], strides = [1, 1]} : vector<16x96xf32> to vector<16x32xf32>
    %168 = vector.extract_strided_slice %158 {offsets = [0, 96], sizes = [16, 32], strides = [1, 1]} : vector<16x128xf32> to vector<16x32xf32>
    %169 = math.tanh %168 : vector<16x32xf32>
    %170 = arith.mulf %166, %149 : vector<16x32xf32>
    %171 = arith.mulf %165, %169 : vector<16x32xf32>
    %172 = arith.addf %170, %171 : vector<16x32xf32>
    %173 = math.tanh %172 : vector<16x32xf32>
    %174 = arith.mulf %167, %173 : vector<16x32xf32>
    %c2_i32_63 = arith.constant 2 : i32
    %c16_i32_64 = arith.constant 16 : i32
    %175 = arith.muli %c2_i32_63, %c16_i32_64 : i32
    %176 = tpu.assume_multiple %175, 16 : i32
    %177 = arith.index_cast %176 : i32 to index
    %c0_65 = arith.constant 0 : index
    %178 = vector.load %arg12[%177, %c0_65] : memref<64x128xf32, #tpu.memory_space<vmem>>, vector<16x128xf32>
    %179 = arith.truncf %174 : vector<16x32xf32> to vector<16x32xbf16>
    %cst_66 = arith.constant dense<0.000000e+00> : vector<16x128xf32>
    %180 = tpu.matmul %179, %126, %cst_66 {dimension_numbers = #tpu.dot_dimension_numbers<[1], [0], [0], [1], [0, 0, 1, 1], [], []>} : vector<16x32xbf16>, vector<32x128xbf16>, vector<16x128xf32> -> vector<16x128xf32>
    %181 = arith.addf %178, %180 : vector<16x128xf32>
    %182 = vector.extract_strided_slice %181 {offsets = [0, 0], sizes = [16, 96], strides = [1, 1]} : vector<16x128xf32> to vector<16x96xf32>
    %183 = arith.negf %182 : vector<16x96xf32>
    %184 = math.exp %183 : vector<16x96xf32>
    %cst_67 = arith.constant 1.000000e+00 : f32
    %185 = vector.broadcast %cst_67 : f32 to vector<16x96xf32>
    %186 = arith.addf %185, %184 : vector<16x96xf32>
    %187 = arith.divf %185, %186 : vector<16x96xf32>
    %188 = vector.extract_strided_slice %187 {offsets = [0, 0], sizes = [16, 32], strides = [1, 1]} : vector<16x96xf32> to vector<16x32xf32>
    %189 = vector.extract_strided_slice %187 {offsets = [0, 32], sizes = [16, 32], strides = [1, 1]} : vector<16x96xf32> to vector<16x32xf32>
    %190 = vector.extract_strided_slice %187 {offsets = [0, 64], sizes = [16, 32], strides = [1, 1]} : vector<16x96xf32> to vector<16x32xf32>
    %191 = vector.extract_strided_slice %181 {offsets = [0, 96], sizes = [16, 32], strides = [1, 1]} : vector<16x128xf32> to vector<16x32xf32>
    %192 = math.tanh %191 : vector<16x32xf32>
    %193 = arith.mulf %189, %172 : vector<16x32xf32>
    %194 = arith.mulf %188, %192 : vector<16x32xf32>
    %195 = arith.addf %193, %194 : vector<16x32xf32>
    %196 = math.tanh %195 : vector<16x32xf32>
    %197 = arith.mulf %190, %196 : vector<16x32xf32>
    %c3_i32_68 = arith.constant 3 : i32
    %c16_i32_69 = arith.constant 16 : i32
    %198 = arith.muli %c3_i32_68, %c16_i32_69 : i32
    %199 = tpu.assume_multiple %198, 16 : i32
    %200 = arith.index_cast %199 : i32 to index
    %c0_70 = arith.constant 0 : index
    %201 = vector.load %arg12[%200, %c0_70] : memref<64x128xf32, #tpu.memory_space<vmem>>, vector<16x128xf32>
    %202 = arith.truncf %197 : vector<16x32xf32> to vector<16x32xbf16>
    %cst_71 = arith.constant dense<0.000000e+00> : vector<16x128xf32>
    %203 = tpu.matmul %202, %126, %cst_71 {dimension_numbers = #tpu.dot_dimension_numbers<[1], [0], [0], [1], [0, 0, 1, 1], [], []>} : vector<16x32xbf16>, vector<32x128xbf16>, vector<16x128xf32> -> vector<16x128xf32>
    %204 = arith.addf %201, %203 : vector<16x128xf32>
    %205 = vector.extract_strided_slice %204 {offsets = [0, 0], sizes = [16, 96], strides = [1, 1]} : vector<16x128xf32> to vector<16x96xf32>
    %206 = arith.negf %205 : vector<16x96xf32>
    %207 = math.exp %206 : vector<16x96xf32>
    %cst_72 = arith.constant 1.000000e+00 : f32
    %208 = vector.broadcast %cst_72 : f32 to vector<16x96xf32>
    %209 = arith.addf %208, %207 : vector<16x96xf32>
    %210 = arith.divf %208, %209 : vector<16x96xf32>
    %211 = vector.extract_strided_slice %210 {offsets = [0, 0], sizes = [16, 32], strides = [1, 1]} : vector<16x96xf32> to vector<16x32xf32>
    %212 = vector.extract_strided_slice %210 {offsets = [0, 32], sizes = [16, 32], strides = [1, 1]} : vector<16x96xf32> to vector<16x32xf32>
    %213 = vector.extract_strided_slice %210 {offsets = [0, 64], sizes = [16, 32], strides = [1, 1]} : vector<16x96xf32> to vector<16x32xf32>
    %214 = vector.extract_strided_slice %204 {offsets = [0, 96], sizes = [16, 32], strides = [1, 1]} : vector<16x128xf32> to vector<16x32xf32>
    %215 = math.tanh %214 : vector<16x32xf32>
    %216 = arith.mulf %212, %195 : vector<16x32xf32>
    %217 = arith.mulf %211, %215 : vector<16x32xf32>
    %218 = arith.addf %216, %217 : vector<16x32xf32>
    %219 = math.tanh %218 : vector<16x32xf32>
    %220 = arith.mulf %213, %219 : vector<16x32xf32>
    %c4_i32_73 = arith.constant 4 : i32
    %c0_74 = arith.constant 0 : index
    %c0_75 = arith.constant 0 : index
    %221 = vector.load %arg15[%c0_74, %c0_75] : memref<16x32xf32, #tpu.memory_space<vmem>>, vector<16x32xf32>
    tpu.vector_store %arg15[%c0_74, %c0_75], %220 {strides = array<i32>} : memref<16x32xf32, #tpu.memory_space<vmem>>, vector<16x32xf32>,
    %c0_76 = arith.constant 0 : index
    %c0_77 = arith.constant 0 : index
    %222 = vector.load %arg16[%c0_76, %c0_77] : memref<16x32xf32, #tpu.memory_space<vmem>>, vector<16x32xf32>
    tpu.vector_store %arg16[%c0_76, %c0_77], %218 {strides = array<i32>} : memref<16x32xf32, #tpu.memory_space<vmem>>, vector<16x32xf32>,
    %c1_i32_78 = arith.constant 1 : i32
    %223 = arith.cmpi eq, %arg0, %c1_i32_78 : i32
    %224 = arith.extui %223 : i1 to i32
    %c0_i32_79 = arith.constant 0 : i32
    %225 = arith.cmpi ne, %224, %c0_i32_79 : i32
    scf.if %225 {
      %c0_80 = arith.constant 0 : index
      %c0_81 = arith.constant 0 : index
      %226 = vector.load %arg13[%c0_80, %c0_81] : memref<16x32xf32, #tpu.memory_space<vmem>>, vector<16x32xf32>
      %c0_82 = arith.constant 0 : index
      %c0_83 = arith.constant 0 : index
      %c0_84 = arith.constant 0 : index
      %227 = vector.load %arg8[%c0_82, %c0_83, %c0_84] : memref<2x16x32xf32, #tpu.memory_space<vmem>>, vector<1x16x32xf32>
      %228 = vector.shape_cast %227 : vector<1x16x32xf32> to vector<16x32xf32>
      %229 = vector.shape_cast %226 : vector<16x32xf32> to vector<1x16x32xf32>
      tpu.vector_store %arg8[%c0_82, %c0_83, %c0_84], %229 {strides = array<i32>} : memref<2x16x32xf32, #tpu.memory_space<vmem>>, vector<1x16x32xf32>,
      %c0_85 = arith.constant 0 : index
      %c0_86 = arith.constant 0 : index
      %230 = vector.load %arg15[%c0_85, %c0_86] : memref<16x32xf32, #tpu.memory_space<vmem>>, vector<16x32xf32>
      %c1 = arith.constant 1 : index
      %c0_87 = arith.constant 0 : index
      %c0_88 = arith.constant 0 : index
      %231 = vector.load %arg8[%c1, %c0_87, %c0_88] : memref<2x16x32xf32, #tpu.memory_space<vmem>>, vector<1x16x32xf32>
      %232 = vector.shape_cast %231 : vector<1x16x32xf32> to vector<16x32xf32>
      %233 = vector.shape_cast %230 : vector<16x32xf32> to vector<1x16x32xf32>
      tpu.vector_store %arg8[%c1, %c0_87, %c0_88], %233 {strides = array<i32>} : memref<2x16x32xf32, #tpu.memory_space<vmem>>, vector<1x16x32xf32>,
      %c0_89 = arith.constant 0 : index
      %c0_90 = arith.constant 0 : index
      %234 = vector.load %arg14[%c0_89, %c0_90] : memref<16x32xf32, #tpu.memory_space<vmem>>, vector<16x32xf32>
      %c0_91 = arith.constant 0 : index
      %c0_92 = arith.constant 0 : index
      %c0_93 = arith.constant 0 : index
      %235 = vector.load %arg9[%c0_91, %c0_92, %c0_93] : memref<2x16x32xf32, #tpu.memory_space<vmem>>, vector<1x16x32xf32>
      %236 = vector.shape_cast %235 : vector<1x16x32xf32> to vector<16x32xf32>
      %237 = vector.shape_cast %234 : vector<16x32xf32> to vector<1x16x32xf32>
      tpu.vector_store %arg9[%c0_91, %c0_92, %c0_93], %237 {strides = array<i32>} : memref<2x16x32xf32, #tpu.memory_space<vmem>>, vector<1x16x32xf32>,
      %c0_94 = arith.constant 0 : index
      %c0_95 = arith.constant 0 : index
      %238 = vector.load %arg16[%c0_94, %c0_95] : memref<16x32xf32, #tpu.memory_space<vmem>>, vector<16x32xf32>
      %c1_96 = arith.constant 1 : index
      %c0_97 = arith.constant 0 : index
      %c0_98 = arith.constant 0 : index
      %239 = vector.load %arg9[%c1_96, %c0_97, %c0_98] : memref<2x16x32xf32, #tpu.memory_space<vmem>>, vector<1x16x32xf32>
      %240 = vector.shape_cast %239 : vector<1x16x32xf32> to vector<16x32xf32>
      %241 = vector.shape_cast %238 : vector<16x32xf32> to vector<1x16x32xf32>
      tpu.vector_store %arg9[%c1_96, %c0_97, %c0_98], %241 {strides = array<i32>} : memref<2x16x32xf32, #tpu.memory_space<vmem>>, vector<1x16x32xf32>,
    } else {
    }
    return
  }
  func.func @transform_0(%arg0: i32) -> (i32, i32) {
    %c0_i32 = arith.constant 0 : i32
    %c0_i32_0 = arith.constant 0 : i32
    return %arg0, %c0_i32 : i32, i32
  }
  func.func @transform_1(%arg0: i32) -> (i32, i32) {
    %c0_i32 = arith.constant 0 : i32
    %c0_i32_0 = arith.constant 0 : i32
    %c0_i32_1 = arith.constant 0 : i32
    return %c0_i32, %c0_i32_0 : i32, i32
  }
  func.func @transform_2(%arg0: i32) -> (i32, i32) {
    %c0_i32 = arith.constant 0 : i32
    %c0_i32_0 = arith.constant 0 : i32
    %c0_i32_1 = arith.constant 0 : i32
    return %c0_i32, %c0_i32_0 : i32, i32
  }
  func.func @transform_3(%arg0: i32) -> (i32, i32) {
    %c0_i32 = arith.constant 0 : i32
    %c0_i32_0 = arith.constant 0 : i32
    %c0_i32_1 = arith.constant 0 : i32
    return %c0_i32, %c0_i32_0 : i32, i32
  }
  func.func @transform_4(%arg0: i32) -> (i32, i32) {
    %c0_i32 = arith.constant 0 : i32
    %c0_i32_0 = arith.constant 0 : i32
    %c0_i32_1 = arith.constant 0 : i32
    return %c0_i32, %c0_i32_0 : i32, i32
  }
  func.func @transform_5(%arg0: i32) -> (i32, i32) {
    %c0_i32 = arith.constant 0 : i32
    %c0_i32_0 = arith.constant 0 : i32
    %c0_i32_1 = arith.constant 0 : i32
    return %c0_i32, %c0_i32_0 : i32, i32
  }
  func.func @transform_6(%arg0: i32) -> (i32, i32) {
    %c0_i32 = arith.constant 0 : i32
    %c0_i32_0 = arith.constant 0 : i32
    %c0_i32_1 = arith.constant 0 : i32
    return %c0_i32, %c0_i32_0 : i32, i32
  }
  func.func @transform_7(%arg0: i32) -> (i32, i32, i32) {
    %c0_i32 = arith.constant 0 : i32
    %c0_i32_0 = arith.constant 0 : i32
    %c0_i32_1 = arith.constant 0 : i32
    %c0_i32_2 = arith.constant 0 : i32
    return %c0_i32, %c0_i32_0, %c0_i32_1 : i32, i32, i32
  }
  func.func @transform_8(%arg0: i32) -> (i32, i32, i32) {
    %c0_i32 = arith.constant 0 : i32
    %c0_i32_0 = arith.constant 0 : i32
    %c0_i32_1 = arith.constant 0 : i32
    %c0_i32_2 = arith.constant 0 : i32
    return %c0_i32, %c0_i32_0, %c0_i32_1 : i32, i32, i32
  }
}

</mosaic_0001>

<bundles_post_ra>
// kernel: tpu_custom_call.1
= control target key start
LH: loop header
LB: loop body
LE: loop exit
PB: predicated region body
PF: predicated region fallthrough
CT: control target
= control target key end

     0   :  { %14 = vsyncpa [#allocation10], 0  ;;  %s2390_s0 = inlined_call_operand.vmem [shape: bf16[128,32], index: 0, kind: input, shape index: {}]   ;;  %s2391_s1 = inlined_call_operand.vmem [shape: bf16[32,128], index: 1, kind: input, shape index: {}]   ;;  %s2392_s2 = inlined_call_operand.vmem [shape: f32[1,128], index: 2, kind: input, shape index: {}]   ;;  %s2393_s3 = inlined_call_operand.vmem [shape: bf16[32,128], index: 3, kind: input, shape index: {}]   ;;  %s2394_s4 = inlined_call_operand.vmem [shape: bf16[32,128], index: 4, kind: input, shape index: {}]   ;;  %s2395_s5 = inlined_call_operand.vmem [shape: f32[1,128], index: 5, kind: input, shape index: {}]   ;;  %s2396_s6 = inlined_call_operand.vmem [shape: bf16[32,128], index: 6, kind: input, shape index: {}]   ;;  %s2397_s7 = inlined_call_operand.hbm [shape: f32[2,16,32], index: 7, kind: output, shape index: {0}]   ;;  %s2398_s8 = inlined_call_operand.hbm [shape: f32[2,16,32], index: 8, kind: output, shape index: {1}]  }
   0x1   :  { %15 = vsyncpa [#allocation12], 0  ;;  %s2038_s27 = smov 0  }
   0x2 LB: > { %s2044_s28 = sadd.s32 4294967295, %s1981_s27   ;;  %p1564_p0 = scmp.ge.s32.totalorder %s1981_s27, 1  ;;  %s1981_s27 = sphi %s2038_s27, %s21_s27  }
   0x3   : > { %p258_p1 = scmp.lt.s32.totalorder %s1981_s27, 3 }
   0x5   : > { %p259_p2 = pnand %p1564_p0, %p258_p1 }
   0x6   : > { %s1565_s29 = sshll.u32 (!%p259_p2), %s2044_s28, 3  ;;  %p1567_p4 = scmp.ne.s32.totalorder (!%p259_p2), %s2044_s28, 0 }
   0x7   : > { %262 = sbr.rel (%p259_p2) target bundleno = 5047 (0x13b7), region = 48  ;;  %p288_p3 = scmp.lt.s32.totalorder (!%p259_p2), %s1565_s29, 15 }
   0xe   : > { %s2400_s29 = smov (!%p288_p3, %s1565_s29), 15  ;;  %297 = sbr.rel (%p1567_p4) target bundleno = 21 (0x15), region = 52 }
   0xf   : > { %s1566_s30 = sshll.u32 %s2400_s29, 2  ;;  %vm298_vm0 = vcmask (!%p1567_p4), 261120   ;;  %v1983_v0 = vmov (!%p1567_p4), 0.0  }
  0x10   : > { %s2052_s11 = scalar_lea.vmem %s2390_s0, %s1566_s30  ;;  %299 = vst.msk [vmem:[#allocation5] sm:$0xff] (!%p1567_p4), %vm298_vm0, %v1983_v0  ;;  %300 = vst.msk [vmem:[#allocation5 + $0x8] sm:$0xff] (!%p1567_p4), %vm298_vm0, %v1983_v0 }
  0x11   : > { %301 = vst.msk [vmem:[#allocation6] sm:$0xff] (!%p1567_p4), %vm298_vm0, %v1983_v0  ;;  %302 = vst.msk [vmem:[#allocation6 + $0x8] sm:$0xff] (!%p1567_p4), %vm298_vm0, %v1983_v0 }
  0x12   : > { %303 = vst.msk [vmem:[#allocation7] sm:$0xff] (!%p1567_p4), %vm298_vm0, %v1983_v0  ;;  %304 = vst.msk [vmem:[#allocation7 + $0x8] sm:$0xff] (!%p1567_p4), %vm298_vm0, %v1983_v0 }
  0x13   : > { %305 = vst.msk [vmem:[#allocation8] sm:$0xff] (!%p1567_p4), %vm298_vm0, %v1983_v0  ;;  %306 = vst.msk [vmem:[#allocation8 + $0x8] sm:$0xff] (!%p1567_p4), %vm298_vm0, %v1983_v0 }
  0x15 PF: > { %v1775_v1 = vld [vmem:[%s2391_s1] sm:$0xff]   ;;  %v1984_v2 = vmov 0.0   ;;  %v1777_v4 = vld [vmem:[%s2391_s1 + $0x8] sm:$0xff]   ;;  %vm358_vm1 = vcmask 261120   ;;  %vm1985_vm2 = vmmov 0   ;;  %s1986_s20 = smov 32  }
  0x16   : > { %1669 = vmatprep.subr.bf16.mxu1 %v1984_v2  ;;  %v2062_v3 = vld [vmem:[%s2393_s3] sm:$0xff]   ;;  %1657 = vmatprep.subr.bf16.mxu0 %v1775_v1  ;;  %v2071_v5 = vld [vmem:[%s2393_s3 + $0x8] sm:$0xff]   ;;  %s1987_s23 = smov 64   ;;  %s1988_s14 = smov 96  }
  0x17   : > { %1658 = vmatpush3.bf16.msra.mxu0 %v1775_v1  ;;  %1670 = vmatpush3.bf16.msra.mxu1 %v2062_v3  ;;  %v1779_v6 = vld [vmem:[%s2052_s11] sm:$0xff]   ;;  %v1780_v7 = vld [vmem:[%s2052_s11 + $0x8] sm:$0xff]   ;;  %p1614_p5 = scmp.ne.s32.totalorder %s2044_s28, 1 }
  0x18   : > { %1659 = vmatprep.subr.bf16.mxu0 %v1777_v4  ;;  %1671 = vmatprep.subr.bf16.mxu1 %v1984_v2  ;;  %v448_v8 = vld [vmem:[#allocation5] sm:$0xff]  ;;  %v449_v9 = vld [vmem:[#allocation5 + $0x8] sm:$0xff]  ;;  %v450_v10 = vld [vmem:[#allocation6] sm:$0xff] }
  0x19   : > { %1673 = vmatprep.mubr.msk.bf16.mxu1 %vm1985_vm2, %v1984_v2  ;;  %1661 = vmatprep.mubr.msk.bf16.mxu0 %vm358_vm1, %v1779_v6  ;;  %v454_v11 = vpack.c.bf16 %v449_v9, %v448_v8  ;;  %v451_v12 = vld [vmem:[#allocation6 + $0x8] sm:$0xff]  ;;  %v2098_v13 = vld [vmem:[%s2392_s2] ss:$0 sm:$0xff] }
  0x1a   : > { %529 = vrot.lane.b32.xlu1 %v450_v10, %s1986_s20 }
  0x1b   : > { %1660 = vmatpush3.bf16.msra.mxu0 %v1777_v4  ;;  %1672 = vmatpush3.bf16.msra.mxu1 %v2071_v5 }
  0x1c   : > { %1677 = vmatprep.subr.bf16.mxu1 %v1984_v2  ;;  %1685 = vmatprep.subr.bf16.mxu0 %v1984_v2 }
  0x1e   : > { %1662 = vmatmul.mubr.msk.bf16.vlgmr.msra.gmra.mrb[0].mxu0 %vm358_vm1, %v1780_v7  ;;  %1674 = vmatmul.mubr.msk.bf16.vlgmr.msra.gmra.mrb[0].mxu1 %vm358_vm1, %v454_v11 }
  0x1f   : > { %1678 = vmatpush3.bf16.msra.mxu1 %v2062_v3  ;;  %1681 = vmatprep.mubr.msk.bf16.mxu1 %vm1985_vm2, %v1984_v2 }
  0x20   : > { %531 = vrot.lane.b32.xlu1 %v451_v12, %s1986_s20  ;;  %1679 = vmatprep.subr.bf16.mxu1 %v1984_v2 }
  0x21   : > { %1686 = vmatpush3.bf16.msra.mxu0 %v2062_v3 }
  0x22   : > { %1687 = vmatprep.subr.bf16.mxu0 %v1984_v2 }
  0x23   : > { %1680 = vmatpush3.bf16.msra.mxu1 %v2071_v5 }
  0x24   : > { %1693 = vmatprep.subr.bf16.mxu1 %v1984_v2 }
  0x25   : > { %1688 = vmatpush3.bf16.msra.mxu0 %v2071_v5 }
  0x8c   : > { %v530_v40 = vpop.permute.xlu1 %529 }
  0x92   : > { %v532_v42 = vpop.permute.xlu1 %531 }
  0xf1   : > { %v2100_v14 = vpop.f32.mrb[0].mxu0  ;;  %v504_v15 = vpop.f32.mrb[0].mxu1 }
  0xf2   : > { %v405_v16 = vpop.f32.mrb[1].mxu0  ;;  %v1675_v17 = vpop.f32.mrb[1].mxu1  ;;  %v414_v56 = vadd.f32 %v2100_v14, %v2098_v13 }
  0xf3   : > { %v406_v18 = vadd.f32 %v2098_v13, %v405_v16  ;;  %v1664_v19 = vpop.f32.mrb[2].mxu0  ;;  %v507_v20 = vpop.f32.mrb[2].mxu1 }
  0xf4   : > { %v408_v21 = vpop.f32.mrb[3].mxu0  ;;  %v1676_v22 = vpop.f32.mrb[3].mxu1  ;;  %v417_v58 = vadd.f32 %v1664_v19, %v2098_v13 }
  0xf5   : > { %v511_v23 = vadd.f32 %v504_v15, %v406_v18  ;;  %v409_v24 = vadd.f32 %v2098_v13, %v408_v21  ;;  %v1781_v22 = vld [vmem:[%s2052_s11 + $0x10] sm:$0xff]  }
  0xf6   : > { %1665 = vmatprep.mubr.msk.bf16.mxu0 %vm358_vm1, %v1781_v22 }
  0xf7   : > { %1787 = vtanh.f32 %v511_v23  ;;  %v512_v25 = vadd.f32 %v507_v20, %v409_v24  ;;  %v1582_v28 = vmul.f32 -1.442695, %v511_v23  ;;  %v1782_v23 = vld [vmem:[%s2052_s11 + $0x18] sm:$0xff]  }
  0xf8   : > { %1666 = vmatmul.mubr.msk.bf16.gmra.mrb[4].mxu0 %vm358_vm1, %v1782_v23 }
  0xf9   : > { %1789 = vtanh.f32 %v512_v25  ;;  %v1583_v29 = vmul.f32 -1.442695, %v512_v25  ;;  %1689 = vmatprep.mubr.msk.bf16.mxu0 %vm1985_vm2, %v1984_v2 }
  0xfa   : > { %1791 = vpow2.f32 %v1582_v28 }
  0xfb   : > { %1793 = vpow2.f32 %v1583_v29 }
 0x101   : > { %v1788_v26 = vpop.eup %1787 }
 0x102   : > { %539 = vrot.lane.b32.xlu0 %v1788_v26, %s1986_s20  ;;  %v1783_v26 = vld [vmem:[%s2394_s4] sm:$0xff]  }
 0x103   : > { %v1790_v27 = vpop.eup %1789  ;;  %1701 = vmatprep.subr.bf16.mxu0 %v1783_v26 }
 0x104   : > { %v1792_v30 = vpop.eup %1791 }
 0x105   : > { %v519_v31 = vadd.f32 1.0, %v1792_v30  ;;  %v1794_v32 = vpop.eup %1793 }
 0x106   : > { %541 = vrot.lane.b32.xlu0 %v1790_v27, %s1986_s20  ;;  %v520_v33 = vadd.f32 1.0, %v1794_v32 }
 0x107   : > { %1795 = vrcp.f32 %v519_v31 }
 0x108   : > { %1797 = vrcp.f32 %v520_v33 }
 0x111   : > { %v1796_v34 = vpop.eup %1795 }
 0x112   : > { %v1798_v37 = vpop.eup %1797  ;;  %v535_v41 = vmul.f32 %v1796_v34, %v530_v40 }
 0x113   : > { %v536_v45 = vmul.f32 %v1798_v37, %v532_v42 }
 0x174   : > { %v540_v35 = vpop.permute.xlu0 %539 }
 0x175   : > { %v545_v36 = vmul.f32 %v1796_v34, %v540_v35 }
 0x177   : > { %549 = vrot.lane.b32.xlu0 %v545_v36, %s1986_s20  ;;  %v1784_v36 = vld [vmem:[%s2394_s4 + $0x8] sm:$0xff]  }
 0x178   : > { %v542_v38 = vpop.permute.xlu0 %541 }
 0x179   : > { %v546_v39 = vmul.f32 %v1798_v37, %v542_v38 }
 0x17b   : > { %551 = vrot.lane.b32.xlu1 %v546_v39, %s1986_s20 }
 0x1cb   : > { %v2144_v32 = vpop.f32.mrb[4].mxu0 }
 0x1cc   : > { %v421_v33 = vpop.f32.mrb[5].mxu0 }
 0x1cd   : > { %v422_v40 = vadd.f32 %v2098_v13, %v421_v33  ;;  %v2221_v33 = vld [vmem:[%s2395_s5] ss:$0 sm:$0xff] }
 0x1e9   : > { %v550_v43 = vpop.permute.xlu0 %549 }
 0x1ea   : > { %v555_v44 = vadd.f32 %v550_v43, %v535_v41 }
 0x1ec   : > { %1799 = vtanh.f32 %v555_v44 }
 0x1ed   : > { %v552_v46 = vpop.permute.xlu1 %551 }
 0x1ee   : > { %v556_v47 = vadd.f32 %v552_v46, %v536_v45 }
 0x1f0   : > { %1801 = vtanh.f32 %v556_v47 }
 0x1f6   : > { %v1800_v48 = vpop.eup %1799 }
 0x1f7   : > { %561 = vrot.lane.b32.xlu0 %v1800_v48, %s1986_s20 }
 0x1fa   : > { %v1802_v49 = vpop.eup %1801 }
 0x1fb   : > { %563 = vrot.lane.b32.xlu1 %v1802_v49, %s1986_s20 }
 0x269   : > { %v562_v50 = vpop.permute.xlu0 %561 }
 0x26a   : > { %v567_v52 = vmul.f32 %v1796_v34, %v562_v50  ;;  %v2146_v34 = vpop.f32.mrb[6].mxu0 }
 0x26b   : > { %v424_v35 = vpop.f32.mrb[7].mxu0 }
 0x26c   : > { %v425_v42 = vadd.f32 %v2098_v13, %v424_v35 }
 0x26d   : > { %v564_v51 = vpop.permute.xlu1 %563 }
 0x26e   : > { %v568_v53 = vmul.f32 %v1798_v37, %v564_v51 }
 0x270   : > { %v569_v54 = vpack.c.bf16 %v568_v53, %v567_v52 }
 0x272   : > { %571 = vrot.lane.b32.xlu0 %v569_v54, %s1987_s23 }
 0x2e4   : > { %v572_v55 = vpop.permute.xlu0 %571 }
 0x2e5   : > { %574 = vst.msk [vmem:[#allocation3] sm:$0xff] %vm358_vm1, %v572_v55  ;;  %1682 = vmatmul.mubr.msk.bf16.vlgmr.msra.gmra.mrb[4].mxu1 %vm358_vm1, %v572_v55 }
 0x2e6   : > { %1694 = vmatpush3.bf16.msra.mxu1 %v2062_v3  ;;  %1697 = vmatprep.mubr.msk.bf16.mxu1 %vm1985_vm2, %v1984_v2 }
 0x2e7   : > { %1695 = vmatprep.subr.bf16.mxu1 %v1984_v2 }
 0x2ea   : > { %1696 = vmatpush3.bf16.msra.mxu1 %v2071_v5 }
 0x2eb   : > { %1713 = vmatprep.subr.bf16.mxu1 %v1984_v2 }
 0x2ec   : > { %v907_v38 = vld [vmem:[#allocation3] sm:$0xff] }
 0x3b8   : > { %v615_v57 = vpop.f32.mrb[4].mxu1 }
 0x3b9   : > { %v622_v59 = vadd.f32 %v615_v57, %v414_v56  ;;  %v1683_v60 = vpop.f32.mrb[5].mxu1 }
 0x3ba   : > { %v618_v61 = vpop.f32.mrb[6].mxu1 }
 0x3bb   : > { %1803 = vtanh.f32 %v622_v59  ;;  %v623_v62 = vadd.f32 %v618_v61, %v417_v58  ;;  %v1684_v63 = vpop.f32.mrb[7].mxu1  ;;  %v1585_v3 = vmul.f32 -1.442695, %v622_v59 }
 0x3bd   : > { %1805 = vtanh.f32 %v623_v62  ;;  %v1586_v4 = vmul.f32 -1.442695, %v623_v62 }
 0x3be   : > { %1807 = vpow2.f32 %v1585_v3 }
 0x3bf   : > { %1809 = vpow2.f32 %v1586_v4 }
 0x3c5   : > { %v1804_v0 = vpop.eup %1803 }
 0x3c6   : > { %642 = vrot.lane.b32.xlu1 %v1804_v0, %s1986_s20 }
 0x3c7   : > { %v1806_v1 = vpop.eup %1805 }
 0x3c8   : > { %644 = vrot.lane.b32.xlu0 %v1806_v1, %s1986_s20  ;;  %v1808_v5 = vpop.eup %1807 }
 0x3c9   : > { %v1810_v6 = vpop.eup %1809  ;;  %v630_v7 = vadd.f32 1.0, %v1808_v5 }
 0x3ca   : > { %v631_v8 = vadd.f32 1.0, %v1810_v6 }
 0x3cb   : > { %1811 = vrcp.f32 %v630_v7 }
 0x3cc   : > { %1813 = vrcp.f32 %v631_v8 }
 0x3d5   : > { %v1812_v9 = vpop.eup %1811 }
 0x3d6   : > { %v1814_v12 = vpop.eup %1813  ;;  %v638_v16 = vmul.f32 %v1812_v9, %v555_v44 }
 0x3d7   : > { %v639_v19 = vmul.f32 %v1814_v12, %v556_v47 }
 0x438   : > { %v643_v10 = vpop.permute.xlu1 %642 }
 0x439   : > { %v648_v11 = vmul.f32 %v1812_v9, %v643_v10 }
 0x43a   : > { %v645_v14 = vpop.permute.xlu0 %644 }
 0x43b   : > { %652 = vrot.lane.b32.xlu1 %v648_v11, %s1986_s20  ;;  %v649_v15 = vmul.f32 %v1814_v12, %v645_v14  ;;  %v2183_v11 = vld [vmem:[%s2396_s6] sm:$0xff]  }
 0x43d   : > { %654 = vrot.lane.b32.xlu0 %v649_v15, %s1986_s20 }
 0x4ad   : > { %v653_v17 = vpop.permute.xlu1 %652 }
 0x4ae   : > { %v2126_v18 = vadd.f32 %v653_v17, %v638_v16 }
 0x4af   : > { %v655_v20 = vpop.permute.xlu0 %654 }
 0x4b0   : > { %1815 = vtanh.f32 %v2126_v18  ;;  %v2129_v21 = vadd.f32 %v655_v20, %v639_v19  ;;  %v1023_v20 = vld [vmem:[#allocation7] sm:$0xff] }
 0x4b2   : > { %1817 = vtanh.f32 %v2129_v21 }
 0x4ba   : > { %v1816_v24 = vpop.eup %1815 }
 0x4bb   : > { %664 = vrot.lane.b32.xlu1 %v1816_v24, %s1986_s20  ;;  %v430_v24 = vadd.f32 %v2144_v32, %v2098_v13 }
 0x4bc   : > { %v1818_v25 = vpop.eup %1817 }
 0x4bd   : > { %666 = vrot.lane.b32.xlu0 %v1818_v25, %s1986_s20 }
 0x52d   : > { %v665_v27 = vpop.permute.xlu1 %664 }
 0x52e   : > { %v670_v29 = vmul.f32 %v1812_v9, %v665_v27 }
 0x52f   : > { %v667_v28 = vpop.permute.xlu0 %666 }
 0x530   : > { %v671_v30 = vmul.f32 %v1814_v12, %v667_v28  ;;  %v2190_v12 = vld [vmem:[%s2396_s6 + $0x8] sm:$0xff]  }
 0x532   : > { %v672_v31 = vpack.c.bf16 %v671_v30, %v670_v29 }
 0x534   : > { %674 = vrot.lane.b32.xlu1 %v672_v31, %s1987_s23 }
 0x5a6   : > { %v675_v37 = vpop.permute.xlu1 %674 }
 0x5a7   : > { %678 = vst.msk [vmem:[#allocation3 + $0x8] sm:$0xff] %vm358_vm1, %v675_v37  ;;  %1690 = vmatmul.mubr.msk.bf16.vlgmr.msra.gmra.mrb[8].mxu0 %vm358_vm1, %v675_v37 }
 0x5a8   : > { %1702 = vmatpush3.bf16.msra.mxu0 %v1783_v26  ;;  %1705 = vmatprep.mubr.msk.bf16.mxu0 %vm358_vm1, %v907_v38  ;;  %v433_v26 = vadd.f32 %v2146_v34, %v2098_v13 }
 0x5a9   : > { %1703 = vmatprep.subr.bf16.mxu0 %v1784_v36 }
 0x5ac   : > { %1704 = vmatpush3.bf16.msra.mxu0 %v1784_v36 }
 0x5ad   : > { %1729 = vmatprep.subr.bf16.mxu0 %v1984_v2 }
 0x5ae   : > { %v908_v39 = vld [vmem:[#allocation3 + $0x8] sm:$0xff] }
 0x5af   : > { %1706 = vmatmul.mubr.msk.bf16.vlgmr.msra.gmra.mrb[12].mxu0 %vm358_vm1, %v908_v39 }
 0x5b0   : > { %1730 = vmatpush3.bf16.msra.mxu0 %v2183_v11 }
 0x5b1   : > { %1731 = vmatprep.subr.bf16.mxu0 %v1984_v2 }
 0x5b4   : > { %1732 = vmatpush3.bf16.msra.mxu0 %v2190_v12 }
 0x67a   : > { %v719_v41 = vpop.f32.mrb[8].mxu0 }
 0x67b   : > { %v726_v43 = vadd.f32 %v719_v41, %v422_v40  ;;  %v1691_v44 = vpop.f32.mrb[9].mxu0  ;;  %v1025_v41 = vld [vmem:[#allocation8] sm:$0xff] }
 0x67c   : > { %v722_v45 = vpop.f32.mrb[10].mxu0 }
 0x67d   : > { %1819 = vtanh.f32 %v726_v43  ;;  %v727_v46 = vadd.f32 %v722_v45, %v425_v42  ;;  %v1692_v47 = vpop.f32.mrb[11].mxu0  ;;  %v1588_v54 = vmul.f32 -1.442695, %v726_v43  ;;  %v1026_v43 = vld [vmem:[#allocation8 + $0x8] sm:$0xff] }
 0x67f   : > { %1821 = vtanh.f32 %v727_v46  ;;  %v1589_v55 = vmul.f32 -1.442695, %v727_v46 }
 0x680   : > { %1823 = vpow2.f32 %v1588_v54 }
 0x681   : > { %1825 = vpow2.f32 %v1589_v55 }
 0x682   : > { %v2158_v48 = vpop.f32.mrb[12].mxu0 }
 0x683   : > { %v2160_v49 = vpop.f32.mrb[13].mxu0 }
 0x684   : > { %v2162_v50 = vpop.f32.mrb[14].mxu0  ;;  %v981_v35 = vadd.f32 %v2221_v33, %v2160_v49 }
 0x685   : > { %v2164_v51 = vpop.f32.mrb[15].mxu0 }
 0x686   : > { %v984_v36 = vadd.f32 %v2221_v33, %v2164_v51 }
 0x687   : > { %v1820_v52 = vpop.eup %1819 }
 0x688   : > { %746 = vrot.lane.b32.xlu0 %v1820_v52, %s1986_s20 }
 0x689   : > { %v1822_v53 = vpop.eup %1821 }
 0x68a   : > { %748 = vrot.lane.b32.xlu1 %v1822_v53, %s1986_s20  ;;  %v1824_v56 = vpop.eup %1823 }
 0x68b   : > { %v1826_v57 = vpop.eup %1825  ;;  %v734_v58 = vadd.f32 1.0, %v1824_v56 }
 0x68c   : > { %v735_v59 = vadd.f32 1.0, %v1826_v57 }
 0x68d   : > { %1827 = vrcp.f32 %v734_v58 }
 0x68e   : > { %1829 = vrcp.f32 %v735_v59 }
 0x697   : > { %v1828_v60 = vpop.eup %1827 }
 0x698   : > { %v1830_v63 = vpop.eup %1829  ;;  %v742_v3 = vmul.f32 %v1828_v60, %v2126_v18 }
 0x699   : > { %v743_v6 = vmul.f32 %v1830_v63, %v2129_v21  ;;  %v1024_v21 = vld [vmem:[#allocation7 + $0x8] sm:$0xff] }
 0x69a   : > { %v1029_v22 = vpack.c.bf16 %v1024_v21, %v1023_v20  ;;  %v989_v21 = vadd.f32 %v2158_v48, %v2221_v33 }
 0x6fa   : > { %v747_v61 = vpop.permute.xlu0 %746 }
 0x6fb   : > { %v752_v62 = vmul.f32 %v1828_v60, %v747_v61 }
 0x6fc   : > { %v749_v0 = vpop.permute.xlu1 %748 }
 0x6fd   : > { %756 = vrot.lane.b32.xlu0 %v752_v62, %s1986_s20  ;;  %v753_v1 = vmul.f32 %v1830_v63, %v749_v0 }
 0x6ff   : > { %758 = vrot.lane.b32.xlu1 %v753_v1, %s1986_s20 }
 0x76f   : > { %v757_v4 = vpop.permute.xlu0 %756 }
 0x770   : > { %v2171_v5 = vadd.f32 %v757_v4, %v742_v3 }
 0x771   : > { %v759_v7 = vpop.permute.xlu1 %758 }
 0x772   : > { %1831 = vtanh.f32 %v2171_v5  ;;  %v2175_v8 = vadd.f32 %v759_v7, %v743_v6 }
 0x774   : > { %1833 = vtanh.f32 %v2175_v8 }
 0x77c   : > { %v1832_v9 = vpop.eup %1831 }
 0x77d   : > { %768 = vrot.lane.b32.xlu0 %v1832_v9, %s1986_s20 }
 0x77e   : > { %v1834_v10 = vpop.eup %1833 }
 0x77f   : > { %770 = vrot.lane.b32.xlu1 %v1834_v10, %s1986_s20 }
 0x7ef   : > { %v769_v14 = vpop.permute.xlu0 %768 }
 0x7f0   : > { %v774_v16 = vmul.f32 %v1828_v60, %v769_v14 }
 0x7f1   : > { %v771_v15 = vpop.permute.xlu1 %770 }
 0x7f2   : > { %v775_v17 = vmul.f32 %v1830_v63, %v771_v15 }
 0x7f4   : > { %v776_v18 = vpack.c.bf16 %v775_v17, %v774_v16 }
 0x7f6   : > { %778 = vrot.lane.b32.xlu0 %v776_v18, %s1987_s23 }
 0x868   : > { %v779_v19 = vpop.permute.xlu0 %778 }
 0x869   : > { %782 = vst.msk [vmem:[#allocation3 + $0x10] sm:$0xff] %vm358_vm1, %v779_v19  ;;  %1698 = vmatmul.mubr.msk.bf16.vlgmr.msra.gmra.mrb[8].mxu1 %vm358_vm1, %v779_v19 }
 0x86a   : > { %1714 = vmatpush3.bf16.msra.mxu1 %v2183_v11  ;;  %1717 = vmatprep.mubr.msk.bf16.mxu1 %vm1985_vm2, %v1984_v2 }
 0x86b   : > { %1715 = vmatprep.subr.bf16.mxu1 %v1984_v2 }
 0x86e   : > { %1716 = vmatpush3.bf16.msra.mxu1 %v2190_v12 }
 0x86f   : > { %1721 = vmatprep.subr.bf16.mxu1 %v1984_v2 }
 0x870   : > { %v909_v23 = vld [vmem:[#allocation3 + $0x10] sm:$0xff] }
 0x871   : > { %1709 = vmatprep.mubr.msk.bf16.mxu0 %vm358_vm1, %v909_v23  ;;  %1718 = vmatmul.mubr.msk.bf16.vlgmr.msra.gmra.mrb[12].mxu1 %vm358_vm1, %v1029_v22 }
 0x872   : > { %1722 = vmatpush3.bf16.msra.mxu1 %v2183_v11  ;;  %1725 = vmatprep.mubr.msk.bf16.mxu1 %vm1985_vm2, %v1984_v2 }
 0x873   : > { %1723 = vmatprep.subr.bf16.mxu1 %v1984_v2 }
 0x876   : > { %1724 = vmatpush3.bf16.msra.mxu1 %v2190_v12 }
 0x877   : > { %1737 = vmatprep.subr.bf16.mxu1 %v1984_v2 }
 0x93c   : > { %v823_v25 = vpop.f32.mrb[8].mxu1 }
 0x93d   : > { %v2214_v27 = vadd.f32 %v823_v25, %v430_v24  ;;  %v1699_v28 = vpop.f32.mrb[9].mxu1 }
 0x93e   : > { %v826_v29 = vpop.f32.mrb[10].mxu1 }
 0x93f   : > { %v2216_v30 = vadd.f32 %v826_v29, %v433_v26  ;;  %v1700_v31 = vpop.f32.mrb[11].mxu1  ;;  %v1591_v18 = vmul.f32 -1.442695, %v2214_v27 }
 0x941   : > { %v1592_v19 = vmul.f32 -1.442695, %v2216_v30 }
 0x944   : > { %v1079_v32 = vpop.f32.mrb[12].mxu1 }
 0x945   : > { %v1086_v13 = vadd.f32 %v1079_v32, %v981_v35  ;;  %v1719_v34 = vpop.f32.mrb[13].mxu1 }
 0x946   : > { %v1082_v37 = vpop.f32.mrb[14].mxu1 }
 0x947   : > { %1835 = vtanh.f32 %v1086_v13  ;;  %v1087_v38 = vadd.f32 %v1082_v37, %v984_v36  ;;  %v1720_v39 = vpop.f32.mrb[15].mxu1  ;;  %v1603_v44 = vmul.f32 -1.442695, %v1086_v13 }
 0x949   : > { %1837 = vtanh.f32 %v1087_v38  ;;  %v1604_v45 = vmul.f32 -1.442695, %v1087_v38 }
 0x94a   : > { %1839 = vpow2.f32 %v1603_v44 }
 0x94b   : > { %1841 = vpow2.f32 %v1604_v45 }
 0x951   : > { %v1836_v40 = vpop.eup %1835 }
 0x952   : > { %1114 = vrot.lane.b32.xlu1 %v1836_v40, %s1986_s20 }
 0x953   : > { %v1838_v42 = vpop.eup %1837 }
 0x954   : > { %1116 = vrot.lane.b32.xlu0 %v1838_v42, %s1986_s20  ;;  %v1840_v46 = vpop.eup %1839 }
 0x955   : > { %v1842_v47 = vpop.eup %1841  ;;  %v1094_v49 = vadd.f32 1.0, %v1840_v46 }
 0x956   : > { %1104 = vrot.lane.b32.xlu1 %v1025_v41, %s1986_s20  ;;  %v1095_v51 = vadd.f32 1.0, %v1842_v47 }
 0x957   : > { %1843 = vrcp.f32 %v1094_v49 }
 0x958   : > { %1106 = vrot.lane.b32.xlu0 %v1026_v43, %s1986_s20  ;;  %1845 = vrcp.f32 %v1095_v51 }
 0x961   : > { %v1844_v52 = vpop.eup %1843 }
 0x962   : > { %v1846_v55 = vpop.eup %1845 }
 0x9c4   : > { %v1115_v53 = vpop.permute.xlu1 %1114 }
 0x9c5   : > { %v1120_v54 = vmul.f32 %v1844_v52, %v1115_v53 }
 0x9c6   : > { %v1117_v56 = vpop.permute.xlu0 %1116 }
 0x9c7   : > { %1124 = vrot.lane.b32.xlu1 %v1120_v54, %s1986_s20  ;;  %v1121_v57 = vmul.f32 %v1846_v55, %v1117_v56 }
 0x9c8   : > { %v1105_v58 = vpop.permute.xlu1 %1104 }
 0x9c9   : > { %1126 = vrot.lane.b32.xlu0 %v1121_v57, %s1986_s20  ;;  %v1110_v59 = vmul.f32 %v1844_v52, %v1105_v58 }
 0x9ca   : > { %v1107_v60 = vpop.permute.xlu0 %1106 }
 0x9cb   : > { %v1111_v63 = vmul.f32 %v1846_v55, %v1107_v60 }
 0xa39   : > { %v1125_v61 = vpop.permute.xlu1 %1124 }
 0xa3a   : > { %v2233_v62 = vadd.f32 %v1125_v61, %v1110_v59 }
 0xa3b   : > { %v1127_v0 = vpop.permute.xlu0 %1126 }
 0xa3c   : > { %1847 = vtanh.f32 %v2233_v62  ;;  %v2236_v1 = vadd.f32 %v1127_v0, %v1111_v63 }
 0xa3e   : > { %1849 = vtanh.f32 %v2236_v1 }
 0xa3f   : > { %1851 = vtanh.f32 %v2214_v27 }
 0xa40   : > { %1853 = vtanh.f32 %v2216_v30 }
 0xa41   : > { %1855 = vpow2.f32 %v1591_v18 }
 0xa42   : > { %1857 = vpow2.f32 %v1592_v19 }
 0xa46   : > { %v1848_v3 = vpop.eup %1847 }
 0xa47   : > { %1136 = vrot.lane.b32.xlu1 %v1848_v3, %s1986_s20 }
 0xa48   : > { %v1850_v4 = vpop.eup %1849 }
 0xa49   : > { %1138 = vrot.lane.b32.xlu0 %v1850_v4, %s1986_s20  ;;  %v1852_v6 = vpop.eup %1851 }
 0xa4a   : > { %v1854_v16 = vpop.eup %1853 }
 0xa4b   : > { %v1856_v20 = vpop.eup %1855 }
 0xa4c   : > { %v1858_v23 = vpop.eup %1857  ;;  %v838_v24 = vadd.f32 1.0, %v1856_v20 }
 0xa4d   : > { %850 = vrot.lane.b32.xlu0 %v1852_v6, %s1986_s20  ;;  %v839_v29 = vadd.f32 1.0, %v1858_v23 }
 0xab9   : > { %v1137_v7 = vpop.permute.xlu1 %1136 }
 0xaba   : > { %v1142_v10 = vmul.f32 %v1844_v52, %v1137_v7 }
 0xabb   : > { %v1139_v9 = vpop.permute.xlu0 %1138 }
 0xabc   : > { %v1143_v14 = vmul.f32 %v1846_v55, %v1139_v9 }
 0xabe   : > { %v1147_v15 = vpack.c.bf16 %v1143_v14, %v1142_v10 }
 0xabf   : > { %v851_v31 = vpop.permute.xlu0 %850 }
 0xac0   : > { %1149 = vrot.lane.b32.xlu1 %v1147_v15, %s1987_s23 }
 0xac4   : > { %852 = vrot.lane.b32.xlu1 %v1854_v16, %s1986_s20 }
 0xb32   : > { %v1150_v17 = vpop.permute.xlu1 %1149 }
 0xb33   : > { %1726 = vmatmul.mubr.msk.bf16.vlgmr.msra.gmra.mrb[16].mxu1 %vm358_vm1, %v1150_v17 }
 0xb34   : > { %1738 = vmatpush3.bf16.msra.mxu1 %v2183_v11  ;;  %1741 = vmatprep.mubr.msk.bf16.mxu1 %vm1985_vm2, %v1984_v2  ;;  %v992_v11 = vadd.f32 %v2162_v50, %v2221_v33 }
 0xb35   : > { %1739 = vmatprep.subr.bf16.mxu1 %v1984_v2 }
 0xb36   : > { %v853_v36 = vpop.permute.xlu1 %852 }
 0xb38   : > { %1740 = vmatpush3.bf16.msra.mxu1 %v2190_v12 }
 0xc06   : > { %v1188_v22 = vpop.f32.mrb[16].mxu1 }
 0xc07   : > { %v1195_v25 = vadd.f32 %v1188_v22, %v989_v21  ;;  %v1727_v26 = vpop.f32.mrb[17].mxu1 }
 0xc08   : > { %v1191_v28 = vpop.f32.mrb[18].mxu1 }
 0xc09   : > { %1859 = vtanh.f32 %v1195_v25  ;;  %v1196_v12 = vadd.f32 %v1191_v28, %v992_v11  ;;  %v1728_v27 = vpop.f32.mrb[19].mxu1  ;;  %v1606_v34 = vmul.f32 -1.442695, %v1195_v25 }
 0xc0a   : > { %1861 = vrcp.f32 %v838_v24 }
 0xc0b   : > { %1863 = vtanh.f32 %v1196_v12  ;;  %v1607_v37 = vmul.f32 -1.442695, %v1196_v12 }
 0xc0c   : > { %1865 = vrcp.f32 %v839_v29 }
 0xc0d   : > { %1867 = vpow2.f32 %v1606_v34 }
 0xc0e   : > { %1869 = vpow2.f32 %v1607_v37 }
 0xc13   : > { %v1860_v30 = vpop.eup %1859 }
 0xc14   : > { %1215 = vrot.lane.b32.xlu0 %v1860_v30, %s1986_s20  ;;  %v1862_v48 = vpop.eup %1861 }
 0xc15   : > { %v1864_v35 = vpop.eup %1863  ;;  %v856_v32 = vmul.f32 %v1862_v48, %v851_v31  ;;  %v846_v47 = vmul.f32 %v1862_v48, %v2171_v5 }
 0xc16   : > { %1217 = vrot.lane.b32.xlu1 %v1864_v35, %s1986_s20  ;;  %v1866_v50 = vpop.eup %1865 }
 0xc17   : > { %v857_v13 = vmul.f32 %v1866_v50, %v853_v36  ;;  %v1868_v38 = vpop.eup %1867  ;;  %v847_v53 = vmul.f32 %v1866_v50, %v2175_v8 }
 0xc18   : > { %860 = vrot.lane.b32.xlu0 %v856_v32, %s1986_s20  ;;  %v1870_v39 = vpop.eup %1869  ;;  %v1203_v40 = vadd.f32 1.0, %v1868_v38 }
 0xc19   : > { %v1204_v41 = vadd.f32 1.0, %v1870_v39 }
 0xc1a   : > { %862 = vrot.lane.b32.xlu1 %v857_v13, %s1986_s20  ;;  %1871 = vrcp.f32 %v1203_v40 }
 0xc1b   : > { %1873 = vrcp.f32 %v1204_v41 }
 0xc24   : > { %v1872_v42 = vpop.eup %1871 }
 0xc25   : > { %v1874_v45 = vpop.eup %1873  ;;  %v1211_v5 = vmul.f32 %v1872_v42, %v2233_v62 }
 0xc26   : > { %v1212_v8 = vmul.f32 %v1874_v45, %v2236_v1 }
 0xc86   : > { %v1216_v43 = vpop.permute.xlu0 %1215 }
 0xc87   : > { %v1221_v44 = vmul.f32 %v1872_v42, %v1216_v43 }
 0xc88   : > { %v1218_v46 = vpop.permute.xlu1 %1217 }
 0xc89   : > { %1225 = vrot.lane.b32.xlu0 %v1221_v44, %s1986_s20  ;;  %v1222_v49 = vmul.f32 %v1874_v45, %v1218_v46 }
 0xc8a   : > { %v861_v51 = vpop.permute.xlu0 %860 }
 0xc8b   : > { %v2264_v52 = vadd.f32 %v861_v51, %v846_v47  ;;  %1227 = vrot.lane.b32.xlu1 %v1222_v49, %s1986_s20 }
 0xc8c   : > { %v863_v54 = vpop.permute.xlu1 %862 }
 0xc8d   : > { %1875 = vtanh.f32 %v2264_v52  ;;  %v2269_v55 = vadd.f32 %v863_v54, %v847_v53 }
 0xc8f   : > { %1877 = vtanh.f32 %v2269_v55 }
 0xc97   : > { %v1876_v56 = vpop.eup %1875 }
 0xc98   : > { %872 = vrot.lane.b32.xlu0 %v1876_v56, %s1986_s20 }
 0xc99   : > { %v1878_v57 = vpop.eup %1877 }
 0xc9a   : > { %874 = vrot.lane.b32.xlu1 %v1878_v57, %s1986_s20 }
 0xcfb   : > { %v1226_v58 = vpop.permute.xlu0 %1225 }
 0xcfc   : > { %v2275_v59 = vadd.f32 %v1226_v58, %v1211_v5 }
 0xcfd   : > { %v1228_v60 = vpop.permute.xlu1 %1227 }
 0xcfe   : > { %1879 = vtanh.f32 %v2275_v59  ;;  %v2279_v61 = vadd.f32 %v1228_v60, %v1212_v8 }
 0xd00   : > { %1881 = vtanh.f32 %v2279_v61 }
 0xd08   : > { %v1880_v63 = vpop.eup %1879 }
 0xd09   : > { %1237 = vrot.lane.b32.xlu0 %v1880_v63, %s1986_s20 }
 0xd0a   : > { %v1882_v0 = vpop.eup %1881  ;;  %v873_v3 = vpop.permute.xlu0 %872 }
 0xd0b   : > { %1239 = vrot.lane.b32.xlu1 %v1882_v0, %s1986_s20  ;;  %v2284_v4 = vmul.f32 %v1862_v48, %v873_v3 }
 0xd0c   : > { %v875_v62 = vpop.permute.xlu1 %874 }
 0xd0d   : > { %v2286_v6 = vmul.f32 %v1866_v50, %v875_v62 }
 0xd0f   : > { %v880_v1 = vpack.c.bf16 %v2286_v6, %v2284_v4 }
 0xd11   : > { %882 = vrot.lane.b32.xlu0 %v880_v1, %s1987_s23 }
 0xd7b   : > { %v1238_v7 = vpop.permute.xlu0 %1237 }
 0xd7c   : > { %v1243_v10 = vmul.f32 %v1872_v42, %v1238_v7 }
 0xd7d   : > { %v1240_v9 = vpop.permute.xlu1 %1239 }
 0xd7e   : > { %v1244_v14 = vmul.f32 %v1874_v45, %v1240_v9 }
 0xd80   : > { %v1248_v15 = vpack.c.bf16 %v1244_v14, %v1243_v10 }
 0xd82   : > { %1250 = vrot.lane.b32.xlu1 %v1248_v15, %s1987_s23 }
 0xd83   : > { %v883_v16 = vpop.permute.xlu0 %882 }
 0xd84   : > { %886 = vst.msk [vmem:[#allocation3 + $0x18] sm:$0xff] %vm358_vm1, %v883_v16 }
 0xd8b   : > { %v910_v17 = vld [vmem:[#allocation3 + $0x18] sm:$0xff] }
 0xd8c   : > { %1710 = vmatmul.mubr.msk.bf16.gmra.mrb[16].mxu0 %vm358_vm1, %v910_v17 }
 0xd8d   : > { %1733 = vmatprep.mubr.msk.bf16.mxu0 %vm1985_vm2, %v1984_v2 }
 0xdf4   : > { %v1251_v18 = vpop.permute.xlu1 %1250 }
 0xdf5   : > { %1734 = vmatmul.mubr.msk.bf16.vlgmr.msra.gmra.mrb[20].mxu0 %vm358_vm1, %v1251_v18 }
 0xe5f   : > { %v1711_v19 = vpop.f32.mrb[16].mxu0 }
 0xe60   : > { %v996_v20 = vpop.f32.mrb[17].mxu0  ;;  %v1005_v5 = vadd.f32 %v1711_v19, %v2221_v33 }
 0xe61   : > { %v1712_v21 = vpop.f32.mrb[18].mxu0  ;;  %v997_v23 = vadd.f32 %v2221_v33, %v996_v20 }
 0xe62   : > { %v999_v22 = vpop.f32.mrb[19].mxu0 }
 0xe63   : > { %v1000_v24 = vadd.f32 %v2221_v33, %v999_v22 }
 0xec8   : > { %v1289_v11 = vpop.f32.mrb[20].mxu0 }
 0xec9   : > { %v1296_v25 = vadd.f32 %v1289_v11, %v997_v23  ;;  %v1735_v26 = vpop.f32.mrb[21].mxu0 }
 0xeca   : > { %v1292_v28 = vpop.f32.mrb[22].mxu0 }
 0xecb   : > { %1883 = vtanh.f32 %v1296_v25  ;;  %v1297_v12 = vadd.f32 %v1292_v28, %v1000_v24  ;;  %v1736_v27 = vpop.f32.mrb[23].mxu0  ;;  %v1609_v30 = vmul.f32 -1.442695, %v1296_v25 }
 0xecd   : > { %1885 = vtanh.f32 %v1297_v12  ;;  %v1610_v31 = vmul.f32 -1.442695, %v1297_v12 }
 0xece   : > { %1887 = vpow2.f32 %v1609_v30 }
 0xecf   : > { %1889 = vpow2.f32 %v1610_v31 }
 0xed5   : > { %v1884_v2 = vpop.eup %1883 }
 0xed6   : > { %1316 = vrot.lane.b32.xlu0 %v1884_v2, %s1986_s20 }
 0xed7   : > { %v1886_v29 = vpop.eup %1885 }
 0xed8   : > { %1318 = vrot.lane.b32.xlu1 %v1886_v29, %s1986_s20  ;;  %v1888_v48 = vpop.eup %1887 }
 0xed9   : > { %v1890_v35 = vpop.eup %1889  ;;  %v1304_v32 = vadd.f32 1.0, %v1888_v48 }
 0xeda   : > { %v1305_v36 = vadd.f32 1.0, %v1890_v35 }
 0xedb   : > { %1891 = vrcp.f32 %v1304_v32 }
 0xedc   : > { %1893 = vrcp.f32 %v1305_v36 }
 0xee5   : > { %v1892_v50 = vpop.eup %1891 }
 0xee6   : > { %v1894_v37 = vpop.eup %1893  ;;  %v1312_v40 = vmul.f32 %v1892_v50, %v2275_v59  ;;  %v1008_v59 = vadd.f32 %v1712_v21, %v2221_v33 }
 0xee7   : > { %v1313_v43 = vmul.f32 %v1894_v37, %v2279_v61 }
 0xf48   : > { %v1317_v13 = vpop.permute.xlu0 %1316 }
 0xf49   : > { %v1322_v34 = vmul.f32 %v1892_v50, %v1317_v13 }
 0xf4a   : > { %v1319_v38 = vpop.permute.xlu1 %1318 }
 0xf4b   : > { %1326 = vrot.lane.b32.xlu0 %v1322_v34, %s1986_s20  ;;  %v1323_v39 = vmul.f32 %v1894_v37, %v1319_v38 }
 0xf4d   : > { %1328 = vrot.lane.b32.xlu1 %v1323_v39, %s1986_s20 }
 0xfbd   : > { %v1327_v41 = vpop.permute.xlu0 %1326 }
 0xfbe   : > { %v1332_v42 = vadd.f32 %v1327_v41, %v1312_v40 }
 0xfbf   : > { %v1329_v44 = vpop.permute.xlu1 %1328 }
 0xfc0   : > { %1895 = vtanh.f32 %v1332_v42  ;;  %v1333_v45 = vadd.f32 %v1329_v44, %v1313_v43 }
 0xfc2   : > { %1897 = vtanh.f32 %v1333_v45 }
 0xfca   : > { %v1896_v46 = vpop.eup %1895 }
 0xfcb   : > { %1338 = vrot.lane.b32.xlu0 %v1896_v46, %s1986_s20 }
 0xfcc   : > { %v1898_v47 = vpop.eup %1897 }
 0xfcd   : > { %1340 = vrot.lane.b32.xlu1 %v1898_v47, %s1986_s20 }
0x103d   : > { %v1339_v49 = vpop.permute.xlu0 %1338 }
0x103e   : > { %v1344_v53 = vmul.f32 %v1892_v50, %v1339_v49 }
0x103f   : > { %v1341_v51 = vpop.permute.xlu1 %1340 }
0x1040   : > { %v1345_v54 = vmul.f32 %v1894_v37, %v1341_v51 }
0x1042   : > { %v1349_v56 = vpack.c.bf16 %v1345_v54, %v1344_v53 }
0x1044   : > { %1351 = vrot.lane.b32.xlu0 %v1349_v56, %s1987_s23 }
0x10b6   : > { %v1352_v57 = vpop.permute.xlu0 %1351 }
0x10b7   : > { %1742 = vmatmul.mubr.msk.bf16.vlgmr.msra.gmra.mrb[20].mxu1 %vm358_vm1, %v1352_v57 }
0x118a   : > { %v1390_v58 = vpop.f32.mrb[20].mxu1 }
0x118b   : > { %v1397_v8 = vadd.f32 %v1390_v58, %v1005_v5  ;;  %v1743_v60 = vpop.f32.mrb[21].mxu1 }
0x118c   : > { %v1393_v61 = vpop.f32.mrb[22].mxu1 }
0x118d   : > { %1899 = vtanh.f32 %v1397_v8  ;;  %v1398_v63 = vadd.f32 %v1393_v61, %v1008_v59  ;;  %v1744_v0 = vpop.f32.mrb[23].mxu1  ;;  %v1612_v1 = vmul.f32 -1.442695, %v1397_v8 }
0x118f   : > { %1901 = vtanh.f32 %v1398_v63  ;;  %v1613_v7 = vmul.f32 -1.442695, %v1398_v63 }
0x1190   : > { %1903 = vpow2.f32 %v1612_v1 }
0x1191   : > { %1905 = vpow2.f32 %v1613_v7 }
0x1197   : > { %v1900_v3 = vpop.eup %1899 }
0x1198   : > { %1417 = vrot.lane.b32.xlu1 %v1900_v3, %s1986_s20 }
0x1199   : > { %v1902_v62 = vpop.eup %1901 }
0x119a   : > { %1419 = vrot.lane.b32.xlu0 %v1902_v62, %s1986_s20  ;;  %v1904_v9 = vpop.eup %1903 }
0x119b   : > { %v1906_v10 = vpop.eup %1905  ;;  %v1405_v33 = vadd.f32 1.0, %v1904_v9 }
0x119c   : > { %v1406_v14 = vadd.f32 1.0, %v1906_v10 }
0x119d   : > { %1907 = vrcp.f32 %v1405_v33 }
0x119e   : > { %1909 = vrcp.f32 %v1406_v14 }
0x11a7   : > { %v1908_v15 = vpop.eup %1907 }
0x11a8   : > { %v1910_v18 = vpop.eup %1909  ;;  %v1413_v21 = vmul.f32 %v1908_v15, %v1332_v42 }
0x11a9   : > { %v1414_v11 = vmul.f32 %v1910_v18, %v1333_v45 }
0x120a   : > { %v1418_v16 = vpop.permute.xlu1 %1417 }
0x120b   : > { %v1423_v17 = vmul.f32 %v1908_v15, %v1418_v16 }
0x120c   : > { %v1420_v19 = vpop.permute.xlu0 %1419 }
0x120d   : > { %1427 = vrot.lane.b32.xlu1 %v1423_v17, %s1986_s20  ;;  %v1424_v20 = vmul.f32 %v1910_v18, %v1420_v19 }
0x120f   : > { %1429 = vrot.lane.b32.xlu0 %v1424_v20, %s1986_s20 }
0x127f   : > { %v1428_v22 = vpop.permute.xlu1 %1427 }
0x1280   : > { %v1433_v23 = vadd.f32 %v1428_v22, %v1413_v21 }
0x1281   : > { %v1430_v24 = vpop.permute.xlu0 %1429 }
0x1282   : > { %1911 = vtanh.f32 %v1433_v23  ;;  %v1434_v25 = vadd.f32 %v1430_v24, %v1414_v11 }
0x1284   : > { %1913 = vtanh.f32 %v1434_v25 }
0x128c   : > { %v1912_v26 = vpop.eup %1911 }
0x128d   : > { %1439 = vrot.lane.b32.xlu1 %v1912_v26, %s1986_s20 }
0x128e   : > { %v1914_v28 = vpop.eup %1913 }
0x128f   : > { %1441 = vrot.lane.b32.xlu0 %v1914_v28, %s1986_s20 }
0x1291   : > { %889 = vrot.lane.b32.xlu1 %v2284_v4, %s1987_s23 }
0x1293   : > { %891 = vrot.lane.b32.xlu0 %v2286_v6, %s1987_s23 }
0x1295   : > { %899 = vrot.lane.b32.xlu1 %v2264_v52, %s1988_s14 }
0x1297   : > { %901 = vrot.lane.b32.xlu0 %v2269_v55, %s1988_s14 }
0x12ff   : > { %v1440_v12 = vpop.permute.xlu1 %1439 }
0x1300   : > { %v1445_v27 = vmul.f32 %v1908_v15, %v1440_v12 }
0x1301   : > { %v1442_v2 = vpop.permute.xlu0 %1441 }
0x1302   : > { %1449 = vrot.lane.b32.xlu1 %v1445_v27, %s1987_s23  ;;  %v1446_v29 = vmul.f32 %v1910_v18, %v1442_v2 }
0x1303   : > { %v890_v30 = vpop.permute.xlu1 %889 }
0x1304   : > { %895 = vst.msk [vmem:[#allocation5] sm:$0xff] %vm358_vm1, %v890_v30  ;;  %1451 = vrot.lane.b32.xlu0 %v1446_v29, %s1987_s23 }
0x1305   : > { %v892_v4 = vpop.permute.xlu0 %891 }
0x1306   : > { %1459 = vrot.lane.b32.xlu1 %v1433_v23, %s1988_s14  ;;  %896 = vst.msk [vmem:[#allocation5 + $0x8] sm:$0xff] %vm358_vm1, %v892_v4 }
0x1307   : > { %v900_v6 = vpop.permute.xlu1 %899 }
0x1308   : > { %905 = vst.msk [vmem:[#allocation6] sm:$0xff] %vm358_vm1, %v900_v6  ;;  %1461 = vrot.lane.b32.xlu0 %v1434_v25, %s1988_s14 }
0x1309   : > { %v902_v52 = vpop.permute.xlu0 %901 }
0x130a   : > { %906 = vst.msk [vmem:[#allocation6 + $0x8] sm:$0xff] %vm358_vm1, %v902_v52 }
0x130b   : > { %v1471_v32 = vld [vmem:[#allocation5] sm:$0xff] (!%p1614_p5) }
0x130c   : > { %1473 = vst.msk [vmem:[#allocation9] sm:$0xff] (!%p1614_p5), %vm358_vm1, %v1471_v32 }
0x130d   : > { %v1472_v36 = vld [vmem:[#allocation5 + $0x8] sm:$0xff] (!%p1614_p5) }
0x130e   : > { %1474 = vst.msk [vmem:[#allocation9 + $0x8] sm:$0xff] (!%p1614_p5), %vm358_vm1, %v1472_v36 }
0x130f   : > { %v1480_v34 = vld [vmem:[#allocation6] sm:$0xff] (!%p1614_p5) }
0x1310   : > { %1482 = vst.msk [vmem:[#allocation11] sm:$0xff] (!%p1614_p5), %vm358_vm1, %v1480_v34 }
0x1311   : > { %v1481_v37 = vld [vmem:[#allocation6 + $0x8] sm:$0xff] (!%p1614_p5) }
0x1312   : > { %1483 = vst.msk [vmem:[#allocation11 + $0x8] sm:$0xff] (!%p1614_p5), %vm358_vm1, %v1481_v37 }
0x1374   : > { %v1450_v55 = vpop.permute.xlu1 %1449 }
0x1375   : > { %1455 = vst.msk [vmem:[#allocation7] sm:$0xff] %vm358_vm1, %v1450_v55  ;;  %1470 = sbr.rel (%p1614_p5) target bundleno = 4996 (0x1384), region = 56 }
0x1376   : > { %v1452_v31 = vpop.permute.xlu0 %1451 }
0x1377   : > { %1456 = vst.msk [vmem:[#allocation7 + $0x8] sm:$0xff] %vm358_vm1, %v1452_v31 }
0x1378   : > { %v1460_v48 = vpop.permute.xlu1 %1459 }
0x1379   : > { %1465 = vst.msk [vmem:[#allocation8] sm:$0xff] %vm358_vm1, %v1460_v48 }
0x137a   : > { %v1462_v35 = vpop.permute.xlu0 %1461 }
0x137b   : > { %1466 = vst.msk [vmem:[#allocation8 + $0x8] sm:$0xff] %vm358_vm1, %v1462_v35 }
0x137c   : > { %v1475_v50 = vld [vmem:[#allocation7] sm:$0xff] }
0x137d   : > { %1478 = vst.msk [vmem:[#allocation9 + $0x10] sm:$0xff] %vm358_vm1, %v1475_v50 }
0x137e   : > { %v1476_v13 = vld [vmem:[#allocation7 + $0x8] sm:$0xff] }
0x137f   : > { %1479 = vst.msk [vmem:[#allocation9 + $0x18] sm:$0xff] %vm358_vm1, %v1476_v13 }
0x1380   : > { %v1484_v38 = vld [vmem:[#allocation8] sm:$0xff] }
0x1381   : > { %1487 = vst.msk [vmem:[#allocation11 + $0x10] sm:$0xff] %vm358_vm1, %v1484_v38 }
0x1382   : > { %v1485_v39 = vld [vmem:[#allocation8 + $0x8] sm:$0xff] }
0x1383   : > { %1488 = vst.msk [vmem:[#allocation11 + $0x18] sm:$0xff] %vm358_vm1, %v1485_v39 }
0x1384 PF: > { %p1753_p6 = scmp.eq.s32.totalorder %s2044_s28, 1  ;;  %s1989_s15 = smov [#allocation9]  }
0x1385   : > { %s1495_s16 = sshll.u32 %s1989_s15, 4  ;;  %s1496_s16 = int_to_ptr.vmem [resolvable:$true] %s1495_s16 }
0x1386   : > { %s1915_s17 = scalar_lea.vmem %s1496_s16, 512  ;;  %p1922_p10 = scmp.lt.s32.totalorder %s1496_s16, %s1496_s16 }
0x1387   : > { %p1916_p7 = scmp.ne.s32.totalorder %s1496_s16, %s1915_s17  ;;  %p1923_p11 = scmp.lt.s32.totalorder %s1915_s17, %s1915_s17 }
0x1389   : > { %p1917_p8 = pnand %p1916_p7, %p1753_p6  ;;  %p1924_p12 = por %p1923_p11, %p1922_p10 }
0x138b   : > { %p1918_p9 = pneg %p1917_p8 }
0x138d   : > { %p1925_p13 = pnand %p1924_p12, %p1918_p9 }
0x138f   : > { %1928 = shalt.err (!%p1925_p13)
}
0x1390   : > { %s1929_s20 = scalar_lea.hbm %s2397_s7, 512 }
0x1391   : > { %p1930_p0 = scmp.ne.s32.totalorder %s2397_s7, %s1929_s20  ;;  %p1935_p3 = scmp.lt.u32.totalorder %s1929_s20, %s2397_s7 }
0x1393   : > { %p1931_p1 = pnand %p1930_p0, %p1753_p6 }
0x1395   : > { %p1932_p2 = pneg %p1931_p1 }
0x1397   : > { %p1937_p4 = pnand %p1935_p3, %p1932_p2 }
0x1399   : > { %1940 = shalt.err (!%p1937_p4)
}
0x139a   : > { %s1990_s25 = smov 128   ;;  %s1991_s26 = smov 8  }
0x139b   : > { %1746 = dma.vmem_to_hbm [thread:$0]  (%p1753_p6), %s1496_s16, 512, %s2397_s7, [#allocation10], %s1990_s25, %s1990_s25, %s1991_s26  }
0x139c   : > { %s1992_s9 = smov [#allocation11]  }
0x139d   : > { %s1508_s10 = sshll.u32 %s1992_s9, 4  ;;  %s1509_s10 = int_to_ptr.vmem [resolvable:$true] %s1508_s10 }
0x139e   : > { %s1941_s11 = scalar_lea.vmem %s1509_s10, 512  ;;  %p1948_p9 = scmp.lt.s32.totalorder %s1509_s10, %s1509_s10 }
0x139f   : > { %p1942_p5 = scmp.ne.s32.totalorder %s1509_s10, %s1941_s11  ;;  %p1949_p10 = scmp.lt.s32.totalorder %s1941_s11, %s1941_s11 }
0x13a1   : > { %p1943_p7 = pnand %p1942_p5, %p1753_p6  ;;  %p1950_p11 = por %p1949_p10, %p1948_p9 }
0x13a3   : > { %p1944_p8 = pneg %p1943_p7 }
0x13a5   : > { %p1951_p12 = pnand %p1950_p11, %p1944_p8 }
0x13a7   : > { %1954 = shalt.err (!%p1951_p12)
}
0x13a8   : > { %s1955_s14 = scalar_lea.hbm %s2398_s8, 512 }
0x13a9   : > { %p1956_p13 = scmp.ne.s32.totalorder %s2398_s8, %s1955_s14  ;;  %p1961_p2 = scmp.lt.u32.totalorder %s1955_s14, %s2398_s8 }
0x13ab   : > { %p1957_p0 = pnand %p1956_p13, %p1753_p6 }
0x13ad   : > { %p1958_p1 = pneg %p1957_p0 }
0x13af   : > { %p1963_p3 = pnand %p1961_p2, %p1958_p1 }
0x13b1   : > { %1966 = shalt.err (!%p1963_p3)
}
0x13b2   : > { %1748 = dma.vmem_to_hbm [thread:$0]  (%p1753_p6), %s1509_s10, 512, %s2398_s8, [#allocation12], %s1990_s25, %s1990_s25, %s1991_s26  }
0x13b3   : > { %1972 = dma.done.wait (%p1753_p6), [#allocation10], 512  }
0x13b4   : > { %1974 = vsyncadd (%p1753_p6), [#allocation10], 4294966784 }
0x13b5   : > { %1976 = dma.done.wait (%p1753_p6), [#allocation12], 512  }
0x13b6   : > { %1978 = vsyncadd (%p1753_p6), [#allocation12], 4294966784 }
0x13b7 PF: > { %s21_s27 = sadd.s32 1, %s1981_s27  }
0x13b8   : > { %p18_p4 = scmp.ge.s32.totalorder %s21_s27, 4  }
0x13ba   :  { %20 = sbr.rel (!%p18_p4) target bundleno = 2 (0x2), region = 102 }
0x13c1   :  { %1528 = vsyncpa [#allocation10], 1 }
0x13c2   :  { %1530 = vsyncpa [#allocation10 + $0x1], 1 }
0x13c3   :  { %1531 = vsyncpa [#allocation12], 1 }

</bundles_post_ra>
